<compile_context>
chip_gen: v7x
topology: tpu7x:2x2x1
jax: 0.10.0
libtpu: 0.0.40
codegen_flags: <defaults>
</compile_context>

<pallas_src>
import functools

import jax
import jax.numpy as jnp
from jax.experimental import pallas as pl
from jax.experimental.pallas import tpu as pltpu


# ----------------------------- Pallas kernel ------------------------------ #
def _lstm_kernel(x_ref,      # (B, S*In)   full sequence, batch_first, flattened
                 w0_ref,     # (In+H, 4H)  stacked [Wih0^T; Whh0^T], gates (i,f,o,g)
                 b0_ref,     # (1, 4H)
                 w1_ref,     # (2H, 4H)    stacked [Wih1^T; Whh1^T], gates (i,f,o,g)
                 b1_ref,     # (1, 4H)
                 fcw_ref,    # (1, H)      fc weight row (output_size == 1)
                 fcb_ref,    # (1, 1)
                 out_ref,    # (B, 1)
                 *, seq_len, in_size, hidden):
    B = x_ref.shape[0]
    H = hidden

    w0 = w0_ref[...]
    b0 = b0_ref[...]
    w1 = w1_ref[...]
    b1 = b1_ref[...]

    def cell(xin_h, c, w, b):
        # one fused MXU matmul per cell: gates = [x, h] @ [Wih^T; Whh^T] + b
        gates = jnp.dot(xin_h, w, preferred_element_type=jnp.float32) + b
        # gate layout (pre-permuted in wrapper): [i | f | o | g]
        sig = jax.nn.sigmoid(gates[:, :3 * H])   # one lane-dense sigmoid
        g = jnp.tanh(gates[:, 3 * H:])           # one lane-dense tanh
        i = sig[:, 0 * H:1 * H]
        f = sig[:, 1 * H:2 * H]
        o = sig[:, 2 * H:3 * H]
        c_new = f * c + i * g
        h_new = o * jnp.tanh(c_new)
        return h_new, c_new

    zeros = jnp.zeros((B, H), jnp.float32)
    h1, c1 = zeros, zeros
    h2, c2 = zeros, zeros

    # fully unrolled in-kernel time loop (S is small & static)
    for t in range(seq_len):
        x_t = x_ref[:, t * in_size:(t + 1) * in_size]          # (B, In), static slice
        h1, c1 = cell(jnp.concatenate([x_t, h1], axis=-1), c1, w0, b0)
        h2, c2 = cell(jnp.concatenate([h1, h2], axis=-1), c2, w1, b1)

    # fc(hidden[-1]) with output_size == 1: VPU multiply + lane reduce
    out_ref[...] = (jnp.sum(h2 * fcw_ref[...], axis=-1, keepdims=True)
                    + fcb_ref[...])


# ------------------------------- wrapper ---------------------------------- #
@jax.jit
def lstm_model_forward(x, params):
    """x: (batch, seq, input) float32 (PyTorch batch_first). Returns (batch, 1)."""
    B, S, In = x.shape
    H = params["whh0"].shape[1]          # whh0: (4H, H)
    O = params["fcw"].shape[0]
    assert O == 1, "reduce-path fc assumes output_size == 1"

    # batch_first kept: contiguous flatten, no HBM transpose
    x2d = x.reshape(B, S * In)

    def reorder_gates(w):  # gate dim is last: (i, f, g, o) -> (i, f, o, g)
        i, f, g, o = jnp.split(w, 4, axis=-1)
        return jnp.concatenate([i, f, o, g], axis=-1)

    # stacked + gate-permuted weights for right-multiplication
    w0 = reorder_gates(jnp.concatenate([params["wih0"].T, params["whh0"].T], axis=0))
    b0 = reorder_gates(params["bih0"] + params["bhh0"])[None, :]          # (1, 4H)
    w1 = reorder_gates(jnp.concatenate([params["wih1"].T, params["whh1"].T], axis=0))
    b1 = reorder_gates(params["bih1"] + params["bhh1"])[None, :]          # (1, 4H)
    fcw = params["fcw"]                                                   # (1, H)
    fcb = params["fcb"].reshape(1, 1)                                     # (1, 1)

    kernel = functools.partial(_lstm_kernel, seq_len=S, in_size=In, hidden=H)

    vmem = lambda: pl.BlockSpec(memory_space=pltpu.MemorySpace.VMEM)

    return pl.pallas_call(
        kernel,
        out_shape=jax.ShapeDtypeStruct((B, 1), jnp.float32),
        in_specs=[vmem() for _ in range(7)],
        out_specs=vmem(),
    )(x2d, w0, b0, w1, b1, fcw, fcb)


# ----------------------- pure-JAX reference (checking) --------------------- #
def lstm_model_ref(x, params):
    B, S, In = x.shape
    H = params["whh0"].shape[1]

    def cell(x_in, h, c, wih, whh, bih, bhh):
        gates = x_in @ wih.T + bih + h @ whh.T + bhh
        i = jax.nn.sigmoid(gates[:, 0 * H:1 * H])
        f = jax.nn.sigmoid(gates[:, 1 * H:2 * H])
        g = jnp.tanh(gates[:, 2 * H:3 * H])
        o = jax.nn.sigmoid(gates[:, 3 * H:4 * H])
        c_new = f * c + i * g
        return o * jnp.tanh(c_new), c_new

    h1 = jnp.zeros((B, H), jnp.float32)
    c1 = jnp.zeros((B, H), jnp.float32)
    h2 = jnp.zeros((B, H), jnp.float32)
    c2 = jnp.zeros((B, H), jnp.float32)
    for t in range(S):
        xt = x[:, t, :]
        h1, c1 = cell(xt, h1, c1, params["wih0"], params["whh0"],
                      params["bih0"], params["bhh0"])
        h2, c2 = cell(h1, h2, c2, params["wih1"], params["whh1"],
                      params["bih1"], params["bhh1"])
    return h2 @ params["fcw"].T + params["fcb"]


# --------------------------------- main ------------------------------------ #
def init_params(key, input_size, hidden_size, output_size):
    H = hidden_size
    bound = 1.0 / jnp.sqrt(H)
    keys = jax.random.split(key, 10)

    def u(k, shape):
        return jax.random.uniform(k, shape, jnp.float32, -bound, bound)

    return {
        "wih0": u(keys[0], (4 * H, input_size)),
        "whh0": u(keys[1], (4 * H, H)),
        "bih0": u(keys[2], (4 * H,)),
        "bhh0": u(keys[3], (4 * H,)),
        "wih1": u(keys[4], (4 * H, H)),
        "whh1": u(keys[5], (4 * H, H)),
        "bih1": u(keys[6], (4 * H,)),
        "bhh1": u(keys[7], (4 * H,)),
        "fcw": u(keys[8], (output_size, H)),
        "fcb": u(keys[9], (output_size,)),
    }


if __name__ == "__main__":
    batch, seq, input_size = 8, 8, 16
    hidden_size, num_layers, output_size = 64, 2, 1

    key = jax.random.PRNGKey(0)
    k_x, k_p = jax.random.split(key)
    x = jax.random.normal(k_x, (batch, seq, input_size), jnp.float32)
    params = init_params(k_p, input_size, hidden_size, output_size)

    out = lstm_model_forward(x, params)
    out = jax.block_until_ready(out)

    ref = lstm_model_ref(x, params)
    assert out.shape == (batch, output_size)
    assert jnp.allclose(out, ref, atol=1e-5, rtol=1e-5), (out, ref)

    print("KERNEL_OK")
</pallas_src>

<mosaic_0001>
module attributes {stable_mosaic.version = 11 : i64} {
  func.func @_lstm_kernel(%arg0: memref<8x128xf32, #tpu.memory_space<vmem>>, %arg1: memref<80x256xf32, #tpu.memory_space<vmem>>, %arg2: memref<1x256xf32, #tpu.memory_space<vmem>>, %arg3: memref<128x256xf32, #tpu.memory_space<vmem>>, %arg4: memref<1x256xf32, #tpu.memory_space<vmem>>, %arg5: memref<1x64xf32, #tpu.memory_space<vmem>>, %arg6: memref<1x1xf32, #tpu.memory_space<vmem>>, %arg7: memref<8x1xf32, #tpu.memory_space<vmem>>) attributes {dimension_semantics = [], scalar_prefetch = 0 : i64, scratch_operands = 0 : i64, tpu.core_type = #tpu.core_type<tc>} {
    %c0 = arith.constant 0 : index
    %c0_0 = arith.constant 0 : index
    %0 = vector.load %arg1[%c0, %c0_0] : memref<80x256xf32, #tpu.memory_space<vmem>>, vector<80x256xf32>
    %c0_1 = arith.constant 0 : index
    %c0_2 = arith.constant 0 : index
    %1 = vector.load %arg2[%c0_1, %c0_2] : memref<1x256xf32, #tpu.memory_space<vmem>>, vector<1x256xf32>
    %c0_3 = arith.constant 0 : index
    %c0_4 = arith.constant 0 : index
    %2 = vector.load %arg3[%c0_3, %c0_4] : memref<128x256xf32, #tpu.memory_space<vmem>>, vector<128x256xf32>
    %c0_5 = arith.constant 0 : index
    %c0_6 = arith.constant 0 : index
    %3 = vector.load %arg4[%c0_5, %c0_6] : memref<1x256xf32, #tpu.memory_space<vmem>>, vector<1x256xf32>
    %cst = arith.constant 0.000000e+00 : f32
    %4 = vector.broadcast %cst : f32 to vector<8x64xf32>
    %c0_7 = arith.constant 0 : index
    %c0_8 = arith.constant 0 : index
    %5 = vector.load %arg0[%c0_7, %c0_8] : memref<8x128xf32, #tpu.memory_space<vmem>>, vector<8x16xf32>
    %6 = tpu.concatenate %5, %4 in 1 : vector<8x16xf32>, vector<8x64xf32> -> vector<8x80xf32>
    %cst_9 = arith.constant dense<0.000000e+00> : vector<8x256xf32>
    %7 = tpu.matmul %6, %0, %cst_9 {dimension_numbers = #tpu.dot_dimension_numbers<[1], [0], [0], [1], [0, 0, 1, 1], [], []>} : vector<8x80xf32>, vector<80x256xf32>, vector<8x256xf32> -> vector<8x256xf32>
    %8 = vector.broadcast %1 : vector<1x256xf32> to vector<8x256xf32>
    %9 = arith.addf %7, %8 : vector<8x256xf32>
    %10 = vector.extract_strided_slice %9 {offsets = [0, 0], sizes = [8, 192], strides = [1, 1]} : vector<8x256xf32> to vector<8x192xf32>
    %11 = arith.negf %10 : vector<8x192xf32>
    %12 = math.exp %11 : vector<8x192xf32>
    %cst_10 = arith.constant 1.000000e+00 : f32
    %13 = vector.broadcast %cst_10 : f32 to vector<8x192xf32>
    %14 = arith.addf %13, %12 : vector<8x192xf32>
    %15 = arith.divf %13, %14 : vector<8x192xf32>
    %16 = vector.extract_strided_slice %9 {offsets = [0, 192], sizes = [8, 64], strides = [1, 1]} : vector<8x256xf32> to vector<8x64xf32>
    %17 = math.tanh %16 : vector<8x64xf32>
    %18 = vector.extract_strided_slice %15 {offsets = [0, 0], sizes = [8, 64], strides = [1, 1]} : vector<8x192xf32> to vector<8x64xf32>
    %19 = vector.extract_strided_slice %15 {offsets = [0, 64], sizes = [8, 64], strides = [1, 1]} : vector<8x192xf32> to vector<8x64xf32>
    %20 = vector.extract_strided_slice %15 {offsets = [0, 128], sizes = [8, 64], strides = [1, 1]} : vector<8x192xf32> to vector<8x64xf32>
    %21 = arith.mulf %19, %4 : vector<8x64xf32>
    %22 = arith.mulf %18, %17 : vector<8x64xf32>
    %23 = arith.addf %21, %22 : vector<8x64xf32>
    %24 = math.tanh %23 : vector<8x64xf32>
    %25 = arith.mulf %20, %24 : vector<8x64xf32>
    %26 = tpu.concatenate %25, %4 in 1 : vector<8x64xf32>, vector<8x64xf32> -> vector<8x128xf32>
    %cst_11 = arith.constant dense<0.000000e+00> : vector<8x256xf32>
    %27 = tpu.matmul %26, %2, %cst_11 {dimension_numbers = #tpu.dot_dimension_numbers<[1], [0], [0], [1], [0, 0, 1, 1], [], []>} : vector<8x128xf32>, vector<128x256xf32>, vector<8x256xf32> -> vector<8x256xf32>
    %28 = vector.broadcast %3 : vector<1x256xf32> to vector<8x256xf32>
    %29 = arith.addf %27, %28 : vector<8x256xf32>
    %30 = vector.extract_strided_slice %29 {offsets = [0, 0], sizes = [8, 192], strides = [1, 1]} : vector<8x256xf32> to vector<8x192xf32>
    %31 = arith.negf %30 : vector<8x192xf32>
    %32 = math.exp %31 : vector<8x192xf32>
    %cst_12 = arith.constant 1.000000e+00 : f32
    %33 = vector.broadcast %cst_12 : f32 to vector<8x192xf32>
    %34 = arith.addf %33, %32 : vector<8x192xf32>
    %35 = arith.divf %33, %34 : vector<8x192xf32>
    %36 = vector.extract_strided_slice %29 {offsets = [0, 192], sizes = [8, 64], strides = [1, 1]} : vector<8x256xf32> to vector<8x64xf32>
    %37 = math.tanh %36 : vector<8x64xf32>
    %38 = vector.extract_strided_slice %35 {offsets = [0, 0], sizes = [8, 64], strides = [1, 1]} : vector<8x192xf32> to vector<8x64xf32>
    %39 = vector.extract_strided_slice %35 {offsets = [0, 64], sizes = [8, 64], strides = [1, 1]} : vector<8x192xf32> to vector<8x64xf32>
    %40 = vector.extract_strided_slice %35 {offsets = [0, 128], sizes = [8, 64], strides = [1, 1]} : vector<8x192xf32> to vector<8x64xf32>
    %41 = arith.mulf %39, %4 : vector<8x64xf32>
    %42 = arith.mulf %38, %37 : vector<8x64xf32>
    %43 = arith.addf %41, %42 : vector<8x64xf32>
    %44 = math.tanh %43 : vector<8x64xf32>
    %45 = arith.mulf %40, %44 : vector<8x64xf32>
    %c0_13 = arith.constant 0 : index
    %c16 = arith.constant 16 : index
    %46 = vector.load %arg0[%c0_13, %c16] : memref<8x128xf32, #tpu.memory_space<vmem>>, vector<8x16xf32>
    %47 = tpu.concatenate %46, %25 in 1 : vector<8x16xf32>, vector<8x64xf32> -> vector<8x80xf32>
    %cst_14 = arith.constant dense<0.000000e+00> : vector<8x256xf32>
    %48 = tpu.matmul %47, %0, %cst_14 {dimension_numbers = #tpu.dot_dimension_numbers<[1], [0], [0], [1], [0, 0, 1, 1], [], []>} : vector<8x80xf32>, vector<80x256xf32>, vector<8x256xf32> -> vector<8x256xf32>
    %49 = vector.broadcast %1 : vector<1x256xf32> to vector<8x256xf32>
    %50 = arith.addf %48, %49 : vector<8x256xf32>
    %51 = vector.extract_strided_slice %50 {offsets = [0, 0], sizes = [8, 192], strides = [1, 1]} : vector<8x256xf32> to vector<8x192xf32>
    %52 = arith.negf %51 : vector<8x192xf32>
    %53 = math.exp %52 : vector<8x192xf32>
    %cst_15 = arith.constant 1.000000e+00 : f32
    %54 = vector.broadcast %cst_15 : f32 to vector<8x192xf32>
    %55 = arith.addf %54, %53 : vector<8x192xf32>
    %56 = arith.divf %54, %55 : vector<8x192xf32>
    %57 = vector.extract_strided_slice %50 {offsets = [0, 192], sizes = [8, 64], strides = [1, 1]} : vector<8x256xf32> to vector<8x64xf32>
    %58 = math.tanh %57 : vector<8x64xf32>
    %59 = vector.extract_strided_slice %56 {offsets = [0, 0], sizes = [8, 64], strides = [1, 1]} : vector<8x192xf32> to vector<8x64xf32>
    %60 = vector.extract_strided_slice %56 {offsets = [0, 64], sizes = [8, 64], strides = [1, 1]} : vector<8x192xf32> to vector<8x64xf32>
    %61 = vector.extract_strided_slice %56 {offsets = [0, 128], sizes = [8, 64], strides = [1, 1]} : vector<8x192xf32> to vector<8x64xf32>
    %62 = arith.mulf %60, %23 : vector<8x64xf32>
    %63 = arith.mulf %59, %58 : vector<8x64xf32>
    %64 = arith.addf %62, %63 : vector<8x64xf32>
    %65 = math.tanh %64 : vector<8x64xf32>
    %66 = arith.mulf %61, %65 : vector<8x64xf32>
    %67 = tpu.concatenate %66, %45 in 1 : vector<8x64xf32>, vector<8x64xf32> -> vector<8x128xf32>
    %cst_16 = arith.constant dense<0.000000e+00> : vector<8x256xf32>
    %68 = tpu.matmul %67, %2, %cst_16 {dimension_numbers = #tpu.dot_dimension_numbers<[1], [0], [0], [1], [0, 0, 1, 1], [], []>} : vector<8x128xf32>, vector<128x256xf32>, vector<8x256xf32> -> vector<8x256xf32>
    %69 = vector.broadcast %3 : vector<1x256xf32> to vector<8x256xf32>
    %70 = arith.addf %68, %69 : vector<8x256xf32>
    %71 = vector.extract_strided_slice %70 {offsets = [0, 0], sizes = [8, 192], strides = [1, 1]} : vector<8x256xf32> to vector<8x192xf32>
    %72 = arith.negf %71 : vector<8x192xf32>
    %73 = math.exp %72 : vector<8x192xf32>
    %cst_17 = arith.constant 1.000000e+00 : f32
    %74 = vector.broadcast %cst_17 : f32 to vector<8x192xf32>
    %75 = arith.addf %74, %73 : vector<8x192xf32>
    %76 = arith.divf %74, %75 : vector<8x192xf32>
    %77 = vector.extract_strided_slice %70 {offsets = [0, 192], sizes = [8, 64], strides = [1, 1]} : vector<8x256xf32> to vector<8x64xf32>
    %78 = math.tanh %77 : vector<8x64xf32>
    %79 = vector.extract_strided_slice %76 {offsets = [0, 0], sizes = [8, 64], strides = [1, 1]} : vector<8x192xf32> to vector<8x64xf32>
    %80 = vector.extract_strided_slice %76 {offsets = [0, 64], sizes = [8, 64], strides = [1, 1]} : vector<8x192xf32> to vector<8x64xf32>
    %81 = vector.extract_strided_slice %76 {offsets = [0, 128], sizes = [8, 64], strides = [1, 1]} : vector<8x192xf32> to vector<8x64xf32>
    %82 = arith.mulf %80, %43 : vector<8x64xf32>
    %83 = arith.mulf %79, %78 : vector<8x64xf32>
    %84 = arith.addf %82, %83 : vector<8x64xf32>
    %85 = math.tanh %84 : vector<8x64xf32>
    %86 = arith.mulf %81, %85 : vector<8x64xf32>
    %c0_18 = arith.constant 0 : index
    %c32 = arith.constant 32 : index
    %87 = vector.load %arg0[%c0_18, %c32] : memref<8x128xf32, #tpu.memory_space<vmem>>, vector<8x16xf32>
    %88 = tpu.concatenate %87, %66 in 1 : vector<8x16xf32>, vector<8x64xf32> -> vector<8x80xf32>
    %cst_19 = arith.constant dense<0.000000e+00> : vector<8x256xf32>
    %89 = tpu.matmul %88, %0, %cst_19 {dimension_numbers = #tpu.dot_dimension_numbers<[1], [0], [0], [1], [0, 0, 1, 1], [], []>} : vector<8x80xf32>, vector<80x256xf32>, vector<8x256xf32> -> vector<8x256xf32>
    %90 = vector.broadcast %1 : vector<1x256xf32> to vector<8x256xf32>
    %91 = arith.addf %89, %90 : vector<8x256xf32>
    %92 = vector.extract_strided_slice %91 {offsets = [0, 0], sizes = [8, 192], strides = [1, 1]} : vector<8x256xf32> to vector<8x192xf32>
    %93 = arith.negf %92 : vector<8x192xf32>
    %94 = math.exp %93 : vector<8x192xf32>
    %cst_20 = arith.constant 1.000000e+00 : f32
    %95 = vector.broadcast %cst_20 : f32 to vector<8x192xf32>
    %96 = arith.addf %95, %94 : vector<8x192xf32>
    %97 = arith.divf %95, %96 : vector<8x192xf32>
    %98 = vector.extract_strided_slice %91 {offsets = [0, 192], sizes = [8, 64], strides = [1, 1]} : vector<8x256xf32> to vector<8x64xf32>
    %99 = math.tanh %98 : vector<8x64xf32>
    %100 = vector.extract_strided_slice %97 {offsets = [0, 0], sizes = [8, 64], strides = [1, 1]} : vector<8x192xf32> to vector<8x64xf32>
    %101 = vector.extract_strided_slice %97 {offsets = [0, 64], sizes = [8, 64], strides = [1, 1]} : vector<8x192xf32> to vector<8x64xf32>
    %102 = vector.extract_strided_slice %97 {offsets = [0, 128], sizes = [8, 64], strides = [1, 1]} : vector<8x192xf32> to vector<8x64xf32>
    %103 = arith.mulf %101, %64 : vector<8x64xf32>
    %104 = arith.mulf %100, %99 : vector<8x64xf32>
    %105 = arith.addf %103, %104 : vector<8x64xf32>
    %106 = math.tanh %105 : vector<8x64xf32>
    %107 = arith.mulf %102, %106 : vector<8x64xf32>
    %108 = tpu.concatenate %107, %86 in 1 : vector<8x64xf32>, vector<8x64xf32> -> vector<8x128xf32>
    %cst_21 = arith.constant dense<0.000000e+00> : vector<8x256xf32>
    %109 = tpu.matmul %108, %2, %cst_21 {dimension_numbers = #tpu.dot_dimension_numbers<[1], [0], [0], [1], [0, 0, 1, 1], [], []>} : vector<8x128xf32>, vector<128x256xf32>, vector<8x256xf32> -> vector<8x256xf32>
    %110 = vector.broadcast %3 : vector<1x256xf32> to vector<8x256xf32>
    %111 = arith.addf %109, %110 : vector<8x256xf32>
    %112 = vector.extract_strided_slice %111 {offsets = [0, 0], sizes = [8, 192], strides = [1, 1]} : vector<8x256xf32> to vector<8x192xf32>
    %113 = arith.negf %112 : vector<8x192xf32>
    %114 = math.exp %113 : vector<8x192xf32>
    %cst_22 = arith.constant 1.000000e+00 : f32
    %115 = vector.broadcast %cst_22 : f32 to vector<8x192xf32>
    %116 = arith.addf %115, %114 : vector<8x192xf32>
    %117 = arith.divf %115, %116 : vector<8x192xf32>
    %118 = vector.extract_strided_slice %111 {offsets = [0, 192], sizes = [8, 64], strides = [1, 1]} : vector<8x256xf32> to vector<8x64xf32>
    %119 = math.tanh %118 : vector<8x64xf32>
    %120 = vector.extract_strided_slice %117 {offsets = [0, 0], sizes = [8, 64], strides = [1, 1]} : vector<8x192xf32> to vector<8x64xf32>
    %121 = vector.extract_strided_slice %117 {offsets = [0, 64], sizes = [8, 64], strides = [1, 1]} : vector<8x192xf32> to vector<8x64xf32>
    %122 = vector.extract_strided_slice %117 {offsets = [0, 128], sizes = [8, 64], strides = [1, 1]} : vector<8x192xf32> to vector<8x64xf32>
    %123 = arith.mulf %121, %84 : vector<8x64xf32>
    %124 = arith.mulf %120, %119 : vector<8x64xf32>
    %125 = arith.addf %123, %124 : vector<8x64xf32>
    %126 = math.tanh %125 : vector<8x64xf32>
    %127 = arith.mulf %122, %126 : vector<8x64xf32>
    %c0_23 = arith.constant 0 : index
    %c48 = arith.constant 48 : index
    %128 = vector.load %arg0[%c0_23, %c48] : memref<8x128xf32, #tpu.memory_space<vmem>>, vector<8x16xf32>
    %129 = tpu.concatenate %128, %107 in 1 : vector<8x16xf32>, vector<8x64xf32> -> vector<8x80xf32>
    %cst_24 = arith.constant dense<0.000000e+00> : vector<8x256xf32>
    %130 = tpu.matmul %129, %0, %cst_24 {dimension_numbers = #tpu.dot_dimension_numbers<[1], [0], [0], [1], [0, 0, 1, 1], [], []>} : vector<8x80xf32>, vector<80x256xf32>, vector<8x256xf32> -> vector<8x256xf32>
    %131 = vector.broadcast %1 : vector<1x256xf32> to vector<8x256xf32>
    %132 = arith.addf %130, %131 : vector<8x256xf32>
    %133 = vector.extract_strided_slice %132 {offsets = [0, 0], sizes = [8, 192], strides = [1, 1]} : vector<8x256xf32> to vector<8x192xf32>
    %134 = arith.negf %133 : vector<8x192xf32>
    %135 = math.exp %134 : vector<8x192xf32>
    %cst_25 = arith.constant 1.000000e+00 : f32
    %136 = vector.broadcast %cst_25 : f32 to vector<8x192xf32>
    %137 = arith.addf %136, %135 : vector<8x192xf32>
    %138 = arith.divf %136, %137 : vector<8x192xf32>
    %139 = vector.extract_strided_slice %132 {offsets = [0, 192], sizes = [8, 64], strides = [1, 1]} : vector<8x256xf32> to vector<8x64xf32>
    %140 = math.tanh %139 : vector<8x64xf32>
    %141 = vector.extract_strided_slice %138 {offsets = [0, 0], sizes = [8, 64], strides = [1, 1]} : vector<8x192xf32> to vector<8x64xf32>
    %142 = vector.extract_strided_slice %138 {offsets = [0, 64], sizes = [8, 64], strides = [1, 1]} : vector<8x192xf32> to vector<8x64xf32>
    %143 = vector.extract_strided_slice %138 {offsets = [0, 128], sizes = [8, 64], strides = [1, 1]} : vector<8x192xf32> to vector<8x64xf32>
    %144 = arith.mulf %142, %105 : vector<8x64xf32>
    %145 = arith.mulf %141, %140 : vector<8x64xf32>
    %146 = arith.addf %144, %145 : vector<8x64xf32>
    %147 = math.tanh %146 : vector<8x64xf32>
    %148 = arith.mulf %143, %147 : vector<8x64xf32>
    %149 = tpu.concatenate %148, %127 in 1 : vector<8x64xf32>, vector<8x64xf32> -> vector<8x128xf32>
    %cst_26 = arith.constant dense<0.000000e+00> : vector<8x256xf32>
    %150 = tpu.matmul %149, %2, %cst_26 {dimension_numbers = #tpu.dot_dimension_numbers<[1], [0], [0], [1], [0, 0, 1, 1], [], []>} : vector<8x128xf32>, vector<128x256xf32>, vector<8x256xf32> -> vector<8x256xf32>
    %151 = vector.broadcast %3 : vector<1x256xf32> to vector<8x256xf32>
    %152 = arith.addf %150, %151 : vector<8x256xf32>
    %153 = vector.extract_strided_slice %152 {offsets = [0, 0], sizes = [8, 192], strides = [1, 1]} : vector<8x256xf32> to vector<8x192xf32>
    %154 = arith.negf %153 : vector<8x192xf32>
    %155 = math.exp %154 : vector<8x192xf32>
    %cst_27 = arith.constant 1.000000e+00 : f32
    %156 = vector.broadcast %cst_27 : f32 to vector<8x192xf32>
    %157 = arith.addf %156, %155 : vector<8x192xf32>
    %158 = arith.divf %156, %157 : vector<8x192xf32>
    %159 = vector.extract_strided_slice %152 {offsets = [0, 192], sizes = [8, 64], strides = [1, 1]} : vector<8x256xf32> to vector<8x64xf32>
    %160 = math.tanh %159 : vector<8x64xf32>
    %161 = vector.extract_strided_slice %158 {offsets = [0, 0], sizes = [8, 64], strides = [1, 1]} : vector<8x192xf32> to vector<8x64xf32>
    %162 = vector.extract_strided_slice %158 {offsets = [0, 64], sizes = [8, 64], strides = [1, 1]} : vector<8x192xf32> to vector<8x64xf32>
    %163 = vector.extract_strided_slice %158 {offsets = [0, 128], sizes = [8, 64], strides = [1, 1]} : vector<8x192xf32> to vector<8x64xf32>
    %164 = arith.mulf %162, %125 : vector<8x64xf32>
    %165 = arith.mulf %161, %160 : vector<8x64xf32>
    %166 = arith.addf %164, %165 : vector<8x64xf32>
    %167 = math.tanh %166 : vector<8x64xf32>
    %168 = arith.mulf %163, %167 : vector<8x64xf32>
    %c0_28 = arith.constant 0 : index
    %c64 = arith.constant 64 : index
    %169 = vector.load %arg0[%c0_28, %c64] : memref<8x128xf32, #tpu.memory_space<vmem>>, vector<8x16xf32>
    %170 = tpu.concatenate %169, %148 in 1 : vector<8x16xf32>, vector<8x64xf32> -> vector<8x80xf32>
    %cst_29 = arith.constant dense<0.000000e+00> : vector<8x256xf32>
    %171 = tpu.matmul %170, %0, %cst_29 {dimension_numbers = #tpu.dot_dimension_numbers<[1], [0], [0], [1], [0, 0, 1, 1], [], []>} : vector<8x80xf32>, vector<80x256xf32>, vector<8x256xf32> -> vector<8x256xf32>
    %172 = vector.broadcast %1 : vector<1x256xf32> to vector<8x256xf32>
    %173 = arith.addf %171, %172 : vector<8x256xf32>
    %174 = vector.extract_strided_slice %173 {offsets = [0, 0], sizes = [8, 192], strides = [1, 1]} : vector<8x256xf32> to vector<8x192xf32>
    %175 = arith.negf %174 : vector<8x192xf32>
    %176 = math.exp %175 : vector<8x192xf32>
    %cst_30 = arith.constant 1.000000e+00 : f32
    %177 = vector.broadcast %cst_30 : f32 to vector<8x192xf32>
    %178 = arith.addf %177, %176 : vector<8x192xf32>
    %179 = arith.divf %177, %178 : vector<8x192xf32>
    %180 = vector.extract_strided_slice %173 {offsets = [0, 192], sizes = [8, 64], strides = [1, 1]} : vector<8x256xf32> to vector<8x64xf32>
    %181 = math.tanh %180 : vector<8x64xf32>
    %182 = vector.extract_strided_slice %179 {offsets = [0, 0], sizes = [8, 64], strides = [1, 1]} : vector<8x192xf32> to vector<8x64xf32>
    %183 = vector.extract_strided_slice %179 {offsets = [0, 64], sizes = [8, 64], strides = [1, 1]} : vector<8x192xf32> to vector<8x64xf32>
    %184 = vector.extract_strided_slice %179 {offsets = [0, 128], sizes = [8, 64], strides = [1, 1]} : vector<8x192xf32> to vector<8x64xf32>
    %185 = arith.mulf %183, %146 : vector<8x64xf32>
    %186 = arith.mulf %182, %181 : vector<8x64xf32>
    %187 = arith.addf %185, %186 : vector<8x64xf32>
    %188 = math.tanh %187 : vector<8x64xf32>
    %189 = arith.mulf %184, %188 : vector<8x64xf32>
    %190 = tpu.concatenate %189, %168 in 1 : vector<8x64xf32>, vector<8x64xf32> -> vector<8x128xf32>
    %cst_31 = arith.constant dense<0.000000e+00> : vector<8x256xf32>
    %191 = tpu.matmul %190, %2, %cst_31 {dimension_numbers = #tpu.dot_dimension_numbers<[1], [0], [0], [1], [0, 0, 1, 1], [], []>} : vector<8x128xf32>, vector<128x256xf32>, vector<8x256xf32> -> vector<8x256xf32>
    %192 = vector.broadcast %3 : vector<1x256xf32> to vector<8x256xf32>
    %193 = arith.addf %191, %192 : vector<8x256xf32>
    %194 = vector.extract_strided_slice %193 {offsets = [0, 0], sizes = [8, 192], strides = [1, 1]} : vector<8x256xf32> to vector<8x192xf32>
    %195 = arith.negf %194 : vector<8x192xf32>
    %196 = math.exp %195 : vector<8x192xf32>
    %cst_32 = arith.constant 1.000000e+00 : f32
    %197 = vector.broadcast %cst_32 : f32 to vector<8x192xf32>
    %198 = arith.addf %197, %196 : vector<8x192xf32>
    %199 = arith.divf %197, %198 : vector<8x192xf32>
    %200 = vector.extract_strided_slice %193 {offsets = [0, 192], sizes = [8, 64], strides = [1, 1]} : vector<8x256xf32> to vector<8x64xf32>
    %201 = math.tanh %200 : vector<8x64xf32>
    %202 = vector.extract_strided_slice %199 {offsets = [0, 0], sizes = [8, 64], strides = [1, 1]} : vector<8x192xf32> to vector<8x64xf32>
    %203 = vector.extract_strided_slice %199 {offsets = [0, 64], sizes = [8, 64], strides = [1, 1]} : vector<8x192xf32> to vector<8x64xf32>
    %204 = vector.extract_strided_slice %199 {offsets = [0, 128], sizes = [8, 64], strides = [1, 1]} : vector<8x192xf32> to vector<8x64xf32>
    %205 = arith.mulf %203, %166 : vector<8x64xf32>
    %206 = arith.mulf %202, %201 : vector<8x64xf32>
    %207 = arith.addf %205, %206 : vector<8x64xf32>
    %208 = math.tanh %207 : vector<8x64xf32>
    %209 = arith.mulf %204, %208 : vector<8x64xf32>
    %c0_33 = arith.constant 0 : index
    %c80 = arith.constant 80 : index
    %210 = vector.load %arg0[%c0_33, %c80] : memref<8x128xf32, #tpu.memory_space<vmem>>, vector<8x16xf32>
    %211 = tpu.concatenate %210, %189 in 1 : vector<8x16xf32>, vector<8x64xf32> -> vector<8x80xf32>
    %cst_34 = arith.constant dense<0.000000e+00> : vector<8x256xf32>
    %212 = tpu.matmul %211, %0, %cst_34 {dimension_numbers = #tpu.dot_dimension_numbers<[1], [0], [0], [1], [0, 0, 1, 1], [], []>} : vector<8x80xf32>, vector<80x256xf32>, vector<8x256xf32> -> vector<8x256xf32>
    %213 = vector.broadcast %1 : vector<1x256xf32> to vector<8x256xf32>
    %214 = arith.addf %212, %213 : vector<8x256xf32>
    %215 = vector.extract_strided_slice %214 {offsets = [0, 0], sizes = [8, 192], strides = [1, 1]} : vector<8x256xf32> to vector<8x192xf32>
    %216 = arith.negf %215 : vector<8x192xf32>
    %217 = math.exp %216 : vector<8x192xf32>
    %cst_35 = arith.constant 1.000000e+00 : f32
    %218 = vector.broadcast %cst_35 : f32 to vector<8x192xf32>
    %219 = arith.addf %218, %217 : vector<8x192xf32>
    %220 = arith.divf %218, %219 : vector<8x192xf32>
    %221 = vector.extract_strided_slice %214 {offsets = [0, 192], sizes = [8, 64], strides = [1, 1]} : vector<8x256xf32> to vector<8x64xf32>
    %222 = math.tanh %221 : vector<8x64xf32>
    %223 = vector.extract_strided_slice %220 {offsets = [0, 0], sizes = [8, 64], strides = [1, 1]} : vector<8x192xf32> to vector<8x64xf32>
    %224 = vector.extract_strided_slice %220 {offsets = [0, 64], sizes = [8, 64], strides = [1, 1]} : vector<8x192xf32> to vector<8x64xf32>
    %225 = vector.extract_strided_slice %220 {offsets = [0, 128], sizes = [8, 64], strides = [1, 1]} : vector<8x192xf32> to vector<8x64xf32>
    %226 = arith.mulf %224, %187 : vector<8x64xf32>
    %227 = arith.mulf %223, %222 : vector<8x64xf32>
    %228 = arith.addf %226, %227 : vector<8x64xf32>
    %229 = math.tanh %228 : vector<8x64xf32>
    %230 = arith.mulf %225, %229 : vector<8x64xf32>
    %231 = tpu.concatenate %230, %209 in 1 : vector<8x64xf32>, vector<8x64xf32> -> vector<8x128xf32>
    %cst_36 = arith.constant dense<0.000000e+00> : vector<8x256xf32>
    %232 = tpu.matmul %231, %2, %cst_36 {dimension_numbers = #tpu.dot_dimension_numbers<[1], [0], [0], [1], [0, 0, 1, 1], [], []>} : vector<8x128xf32>, vector<128x256xf32>, vector<8x256xf32> -> vector<8x256xf32>
    %233 = vector.broadcast %3 : vector<1x256xf32> to vector<8x256xf32>
    %234 = arith.addf %232, %233 : vector<8x256xf32>
    %235 = vector.extract_strided_slice %234 {offsets = [0, 0], sizes = [8, 192], strides = [1, 1]} : vector<8x256xf32> to vector<8x192xf32>
    %236 = arith.negf %235 : vector<8x192xf32>
    %237 = math.exp %236 : vector<8x192xf32>
    %cst_37 = arith.constant 1.000000e+00 : f32
    %238 = vector.broadcast %cst_37 : f32 to vector<8x192xf32>
    %239 = arith.addf %238, %237 : vector<8x192xf32>
    %240 = arith.divf %238, %239 : vector<8x192xf32>
    %241 = vector.extract_strided_slice %234 {offsets = [0, 192], sizes = [8, 64], strides = [1, 1]} : vector<8x256xf32> to vector<8x64xf32>
    %242 = math.tanh %241 : vector<8x64xf32>
    %243 = vector.extract_strided_slice %240 {offsets = [0, 0], sizes = [8, 64], strides = [1, 1]} : vector<8x192xf32> to vector<8x64xf32>
    %244 = vector.extract_strided_slice %240 {offsets = [0, 64], sizes = [8, 64], strides = [1, 1]} : vector<8x192xf32> to vector<8x64xf32>
    %245 = vector.extract_strided_slice %240 {offsets = [0, 128], sizes = [8, 64], strides = [1, 1]} : vector<8x192xf32> to vector<8x64xf32>
    %246 = arith.mulf %244, %207 : vector<8x64xf32>
    %247 = arith.mulf %243, %242 : vector<8x64xf32>
    %248 = arith.addf %246, %247 : vector<8x64xf32>
    %249 = math.tanh %248 : vector<8x64xf32>
    %250 = arith.mulf %245, %249 : vector<8x64xf32>
    %c0_38 = arith.constant 0 : index
    %c96 = arith.constant 96 : index
    %251 = vector.load %arg0[%c0_38, %c96] : memref<8x128xf32, #tpu.memory_space<vmem>>, vector<8x16xf32>
    %252 = tpu.concatenate %251, %230 in 1 : vector<8x16xf32>, vector<8x64xf32> -> vector<8x80xf32>
    %cst_39 = arith.constant dense<0.000000e+00> : vector<8x256xf32>
    %253 = tpu.matmul %252, %0, %cst_39 {dimension_numbers = #tpu.dot_dimension_numbers<[1], [0], [0], [1], [0, 0, 1, 1], [], []>} : vector<8x80xf32>, vector<80x256xf32>, vector<8x256xf32> -> vector<8x256xf32>
    %254 = vector.broadcast %1 : vector<1x256xf32> to vector<8x256xf32>
    %255 = arith.addf %253, %254 : vector<8x256xf32>
    %256 = vector.extract_strided_slice %255 {offsets = [0, 0], sizes = [8, 192], strides = [1, 1]} : vector<8x256xf32> to vector<8x192xf32>
    %257 = arith.negf %256 : vector<8x192xf32>
    %258 = math.exp %257 : vector<8x192xf32>
    %cst_40 = arith.constant 1.000000e+00 : f32
    %259 = vector.broadcast %cst_40 : f32 to vector<8x192xf32>
    %260 = arith.addf %259, %258 : vector<8x192xf32>
    %261 = arith.divf %259, %260 : vector<8x192xf32>
    %262 = vector.extract_strided_slice %255 {offsets = [0, 192], sizes = [8, 64], strides = [1, 1]} : vector<8x256xf32> to vector<8x64xf32>
    %263 = math.tanh %262 : vector<8x64xf32>
    %264 = vector.extract_strided_slice %261 {offsets = [0, 0], sizes = [8, 64], strides = [1, 1]} : vector<8x192xf32> to vector<8x64xf32>
    %265 = vector.extract_strided_slice %261 {offsets = [0, 64], sizes = [8, 64], strides = [1, 1]} : vector<8x192xf32> to vector<8x64xf32>
    %266 = vector.extract_strided_slice %261 {offsets = [0, 128], sizes = [8, 64], strides = [1, 1]} : vector<8x192xf32> to vector<8x64xf32>
    %267 = arith.mulf %265, %228 : vector<8x64xf32>
    %268 = arith.mulf %264, %263 : vector<8x64xf32>
    %269 = arith.addf %267, %268 : vector<8x64xf32>
    %270 = math.tanh %269 : vector<8x64xf32>
    %271 = arith.mulf %266, %270 : vector<8x64xf32>
    %272 = tpu.concatenate %271, %250 in 1 : vector<8x64xf32>, vector<8x64xf32> -> vector<8x128xf32>
    %cst_41 = arith.constant dense<0.000000e+00> : vector<8x256xf32>
    %273 = tpu.matmul %272, %2, %cst_41 {dimension_numbers = #tpu.dot_dimension_numbers<[1], [0], [0], [1], [0, 0, 1, 1], [], []>} : vector<8x128xf32>, vector<128x256xf32>, vector<8x256xf32> -> vector<8x256xf32>
    %274 = vector.broadcast %3 : vector<1x256xf32> to vector<8x256xf32>
    %275 = arith.addf %273, %274 : vector<8x256xf32>
    %276 = vector.extract_strided_slice %275 {offsets = [0, 0], sizes = [8, 192], strides = [1, 1]} : vector<8x256xf32> to vector<8x192xf32>
    %277 = arith.negf %276 : vector<8x192xf32>
    %278 = math.exp %277 : vector<8x192xf32>
    %cst_42 = arith.constant 1.000000e+00 : f32
    %279 = vector.broadcast %cst_42 : f32 to vector<8x192xf32>
    %280 = arith.addf %279, %278 : vector<8x192xf32>
    %281 = arith.divf %279, %280 : vector<8x192xf32>
    %282 = vector.extract_strided_slice %275 {offsets = [0, 192], sizes = [8, 64], strides = [1, 1]} : vector<8x256xf32> to vector<8x64xf32>
    %283 = math.tanh %282 : vector<8x64xf32>
    %284 = vector.extract_strided_slice %281 {offsets = [0, 0], sizes = [8, 64], strides = [1, 1]} : vector<8x192xf32> to vector<8x64xf32>
    %285 = vector.extract_strided_slice %281 {offsets = [0, 64], sizes = [8, 64], strides = [1, 1]} : vector<8x192xf32> to vector<8x64xf32>
    %286 = vector.extract_strided_slice %281 {offsets = [0, 128], sizes = [8, 64], strides = [1, 1]} : vector<8x192xf32> to vector<8x64xf32>
    %287 = arith.mulf %285, %248 : vector<8x64xf32>
    %288 = arith.mulf %284, %283 : vector<8x64xf32>
    %289 = arith.addf %287, %288 : vector<8x64xf32>
    %290 = math.tanh %289 : vector<8x64xf32>
    %291 = arith.mulf %286, %290 : vector<8x64xf32>
    %c0_43 = arith.constant 0 : index
    %c112 = arith.constant 112 : index
    %292 = vector.load %arg0[%c0_43, %c112] : memref<8x128xf32, #tpu.memory_space<vmem>>, vector<8x16xf32>
    %293 = tpu.concatenate %292, %271 in 1 : vector<8x16xf32>, vector<8x64xf32> -> vector<8x80xf32>
    %cst_44 = arith.constant dense<0.000000e+00> : vector<8x256xf32>
    %294 = tpu.matmul %293, %0, %cst_44 {dimension_numbers = #tpu.dot_dimension_numbers<[1], [0], [0], [1], [0, 0, 1, 1], [], []>} : vector<8x80xf32>, vector<80x256xf32>, vector<8x256xf32> -> vector<8x256xf32>
    %295 = vector.broadcast %1 : vector<1x256xf32> to vector<8x256xf32>
    %296 = arith.addf %294, %295 : vector<8x256xf32>
    %297 = vector.extract_strided_slice %296 {offsets = [0, 0], sizes = [8, 192], strides = [1, 1]} : vector<8x256xf32> to vector<8x192xf32>
    %298 = arith.negf %297 : vector<8x192xf32>
    %299 = math.exp %298 : vector<8x192xf32>
    %cst_45 = arith.constant 1.000000e+00 : f32
    %300 = vector.broadcast %cst_45 : f32 to vector<8x192xf32>
    %301 = arith.addf %300, %299 : vector<8x192xf32>
    %302 = arith.divf %300, %301 : vector<8x192xf32>
    %303 = vector.extract_strided_slice %296 {offsets = [0, 192], sizes = [8, 64], strides = [1, 1]} : vector<8x256xf32> to vector<8x64xf32>
    %304 = math.tanh %303 : vector<8x64xf32>
    %305 = vector.extract_strided_slice %302 {offsets = [0, 0], sizes = [8, 64], strides = [1, 1]} : vector<8x192xf32> to vector<8x64xf32>
    %306 = vector.extract_strided_slice %302 {offsets = [0, 64], sizes = [8, 64], strides = [1, 1]} : vector<8x192xf32> to vector<8x64xf32>
    %307 = vector.extract_strided_slice %302 {offsets = [0, 128], sizes = [8, 64], strides = [1, 1]} : vector<8x192xf32> to vector<8x64xf32>
    %308 = arith.mulf %306, %269 : vector<8x64xf32>
    %309 = arith.mulf %305, %304 : vector<8x64xf32>
    %310 = arith.addf %308, %309 : vector<8x64xf32>
    %311 = math.tanh %310 : vector<8x64xf32>
    %312 = arith.mulf %307, %311 : vector<8x64xf32>
    %313 = tpu.concatenate %312, %291 in 1 : vector<8x64xf32>, vector<8x64xf32> -> vector<8x128xf32>
    %cst_46 = arith.constant dense<0.000000e+00> : vector<8x256xf32>
    %314 = tpu.matmul %313, %2, %cst_46 {dimension_numbers = #tpu.dot_dimension_numbers<[1], [0], [0], [1], [0, 0, 1, 1], [], []>} : vector<8x128xf32>, vector<128x256xf32>, vector<8x256xf32> -> vector<8x256xf32>
    %315 = vector.broadcast %3 : vector<1x256xf32> to vector<8x256xf32>
    %316 = arith.addf %314, %315 : vector<8x256xf32>
    %317 = vector.extract_strided_slice %316 {offsets = [0, 0], sizes = [8, 192], strides = [1, 1]} : vector<8x256xf32> to vector<8x192xf32>
    %318 = arith.negf %317 : vector<8x192xf32>
    %319 = math.exp %318 : vector<8x192xf32>
    %cst_47 = arith.constant 1.000000e+00 : f32
    %320 = vector.broadcast %cst_47 : f32 to vector<8x192xf32>
    %321 = arith.addf %320, %319 : vector<8x192xf32>
    %322 = arith.divf %320, %321 : vector<8x192xf32>
    %323 = vector.extract_strided_slice %316 {offsets = [0, 192], sizes = [8, 64], strides = [1, 1]} : vector<8x256xf32> to vector<8x64xf32>
    %324 = math.tanh %323 : vector<8x64xf32>
    %325 = vector.extract_strided_slice %322 {offsets = [0, 0], sizes = [8, 64], strides = [1, 1]} : vector<8x192xf32> to vector<8x64xf32>
    %326 = vector.extract_strided_slice %322 {offsets = [0, 64], sizes = [8, 64], strides = [1, 1]} : vector<8x192xf32> to vector<8x64xf32>
    %327 = vector.extract_strided_slice %322 {offsets = [0, 128], sizes = [8, 64], strides = [1, 1]} : vector<8x192xf32> to vector<8x64xf32>
    %328 = arith.mulf %326, %289 : vector<8x64xf32>
    %329 = arith.mulf %325, %324 : vector<8x64xf32>
    %330 = arith.addf %328, %329 : vector<8x64xf32>
    %331 = math.tanh %330 : vector<8x64xf32>
    %332 = arith.mulf %327, %331 : vector<8x64xf32>
    %c0_48 = arith.constant 0 : index
    %c0_49 = arith.constant 0 : index
    %333 = vector.load %arg5[%c0_48, %c0_49] : memref<1x64xf32, #tpu.memory_space<vmem>>, vector<1x64xf32>
    %334 = vector.broadcast %333 : vector<1x64xf32> to vector<8x64xf32>
    %335 = arith.mulf %332, %334 : vector<8x64xf32>
    %cst_50 = arith.constant dense<0.000000e+00> : vector<8xf32>
    %336 = vector.multi_reduction <add>, %335, %cst_50 [1] : vector<8x64xf32> to vector<8xf32>
    %337 = vector.shape_cast %336 : vector<8xf32> to vector<8x1xf32>
    %c0_51 = arith.constant 0 : index
    %c0_52 = arith.constant 0 : index
    %338 = vector.load %arg6[%c0_51, %c0_52] : memref<1x1xf32, #tpu.memory_space<vmem>>, vector<1x1xf32>
    %339 = vector.broadcast %338 : vector<1x1xf32> to vector<8x1xf32>
    %340 = arith.addf %337, %339 : vector<8x1xf32>
    %c0_53 = arith.constant 0 : index
    %c0_54 = arith.constant 0 : index
    %341 = vector.load %arg7[%c0_53, %c0_54] : memref<8x1xf32, #tpu.memory_space<vmem>>, vector<8x1xf32>
    tpu.vector_store %arg7[%c0_53, %c0_54], %340 {strides = array<i32>} : memref<8x1xf32, #tpu.memory_space<vmem>>, vector<8x1xf32>,
    return
  }
}

</mosaic_0001>

<bundles_post_ra>
// kernel: lstm_model_forward.1
= control target key start
LH: loop header
LB: loop body
LE: loop exit
PB: predicated region body
PF: predicated region fallthrough
CT: control target
= control target key end

     0   :  { %v2527_v3 = vmov 0.0   ;;  %vm83_vm0 = vcmask 130048   ;;  %vm96_vm1 = vcmask 654336   ;;  %v86_v33 = vlaneseq  ;;  %s2528_s21 = smov 64   ;;  %s2530_s14 = smov 16   ;;  %s3241_s1 = inlined_call_operand.vmem [shape: f32[80,256], index: 1, kind: input, shape index: {}]   ;;  %s3242_s0 = inlined_call_operand.vmem [shape: f32[8,128], index: 0, kind: input, shape index: {}]   ;;  %s3243_s2 = inlined_call_operand.vmem [shape: f32[1,256], index: 2, kind: input, shape index: {}]   ;;  %s3244_s3 = inlined_call_operand.vmem [shape: f32[128,256], index: 3, kind: input, shape index: {}]   ;;  %s3245_s4 = inlined_call_operand.vmem [shape: f32[1,256], index: 4, kind: input, shape index: {}]   ;;  %s3246_s6 = inlined_call_operand.<no memory space> [shape: f32[1,1], index: 6, kind: input, shape index: {}]   ;;  %s3247_s5 = inlined_call_operand.vmem [shape: f32[1,64], index: 5, kind: input, shape index: {}]   ;;  %s3248_s7 = inlined_call_operand.vmem [shape: f32[8,1], index: 7, kind: output, shape index: {}]  }
   0x1   :  { %v29_v0 = vld [vmem:[%s3241_s1 + $0x8] sm:$0xff]  ;;  %v31_v1 = vld [vmem:[%s3241_s1 + $0x18] sm:$0xff]  ;;  %v28_v2 = vld [vmem:[%s3241_s1] sm:$0xff]  ;;  %164 = vmatprep.mubr.f32.mxu0 %v2527_v3  ;;  %278 = vmatprep.mubr.f32.mxu1 %v2527_v3  ;;  %vm201_vm2 = vcmask 523264   ;;  %s2532_s17 = smov 80   ;;  %vm1861_vm3 = vcmask 7168  }
   0x2   :  { %v2586_v4 = vpack.c.bf16 %v31_v1, %v29_v0  ;;  %v30_v5 = vld [vmem:[%s3241_s1 + $0x10] sm:$0xff]  ;;  %v33_v6 = vld [vmem:[%s3241_s1 + $0x28] sm:$0xff]  ;;  %v35_v7 = vld [vmem:[%s3241_s1 + $0x38] sm:$0xff]  ;;  %v2687_v34 = vshrl.u32 %v86_v33, 7 }
   0x3   :  { %v2597_v8 = vpack.c.bf16 %v30_v5, %v28_v2  ;;  %v2599_v9 = vpack.c.bf16 %v35_v7, %v33_v6  ;;  %v32_v10 = vld [vmem:[%s3241_s1 + $0x20] sm:$0xff]  ;;  %v34_v11 = vld [vmem:[%s3241_s1 + $0x30] sm:$0xff]  ;;  %v37_v12 = vld [vmem:[%s3241_s1 + $0x48] sm:$0xff] }
   0x4   :  { %1911 = vmatprep.subr.bf16.mxu0 %v2586_v4  ;;  %v39_v13 = vld [vmem:[%s3241_s1 + $0x58] sm:$0xff]  ;;  %v2615_v14 = vpack.c.bf16 %v34_v11, %v32_v10  ;;  %v36_v16 = vld [vmem:[%s3241_s1 + $0x40] sm:$0xff]  ;;  %v38_v17 = vld [vmem:[%s3241_s1 + $0x50] sm:$0xff]  ;;  %v92_v35 = vsub.s32 1, %v2687_v34  ;;  %v88_v42 = vsub.s32 0, %v2687_v34 }
   0x5   :  { %1913 = vmatpush1.bf16.msra.mxu0 %v2597_v8  ;;  %v2618_v15 = vpack.c.bf16 %v39_v13, %v37_v12  ;;  %v41_v18 = vld [vmem:[%s3241_s1 + $0x68] sm:$0xff]  ;;  %v43_v19 = vld [vmem:[%s3241_s1 + $0x78] sm:$0xff]  ;;  %v2633_v20 = vpack.c.bf16 %v38_v17, %v36_v16  ;;  %v40_v22 = vld [vmem:[%s3241_s1 + $0x60] sm:$0xff] }
   0x6   :  { %1915 = vmatprep.subr.bf16.mxu0 %v2599_v9  ;;  %v2636_v21 = vpack.c.bf16 %v43_v19, %v41_v18  ;;  %v42_v23 = vld [vmem:[%s3241_s1 + $0x70] sm:$0xff]  ;;  %v45_v24 = vld [vmem:[%s3241_s1 + $0x88] sm:$0xff]  ;;  %v47_v25 = vld [vmem:[%s3241_s1 + $0x98] sm:$0xff] }
   0x7   :  { %v2651_v26 = vpack.c.bf16 %v42_v23, %v40_v22  ;;  %v2654_v27 = vpack.c.bf16 %v47_v25, %v45_v24  ;;  %v44_v28 = vld [vmem:[%s3241_s1 + $0x80] sm:$0xff]  ;;  %v46_v29 = vld [vmem:[%s3241_s1 + $0x90] sm:$0xff]  ;;  %v50_v51 = vld [vmem:[%s3244_s3 + $0x8] sm:$0xff]  ;;  %s2533_s1 = smov 48  }
   0x8   :  { %v2663_v30 = vpack.c.bf16 %v46_v29, %v44_v28  ;;  %v2669_v31 = vld [vmem:[%s3242_s0] sm:$0xff]  ;;  %v52_v52 = vld [vmem:[%s3244_s3 + $0x18] sm:$0xff]  ;;  %v51_v55 = vld [vmem:[%s3244_s3 + $0x10] sm:$0xff] }
   0x9   :  { %1917 = vmatpush1.bf16.msra.mxu0 %v2615_v14  ;;  %v84_v32 = vsel %vm83_vm0, %v2669_v31, 0.0  ;;  %v48_v36 = vld [vmem:[%s3243_s2] sm:$0x3]  ;;  %v2721_v54 = vpack.c.bf16 %v52_v52, %v50_v51  ;;  %v54_v56 = vld [vmem:[%s3244_s3 + $0x28] sm:$0xff]  ;;  %v56_v57 = vld [vmem:[%s3244_s3 + $0x38] sm:$0xff] }
   0xa   :  { %1919 = vmatprep.subr.bf16.mxu0 %v2618_v15  ;;  %v2695_v37 = vrot.slane %v48_v36, %v92_v35  ;;  %v2705_v43 = vrot.slane %v48_v36, %v88_v42  ;;  %v49_v53 = vld [vmem:[%s3244_s3] sm:$0xff]  ;;  %v2734_v59 = vpack.c.bf16 %v56_v57, %v54_v56  ;;  %v55_v61 = vld [vmem:[%s3244_s3 + $0x30] sm:$0xff]  ;;  %v58_v62 = vld [vmem:[%s3244_s3 + $0x48] sm:$0xff] }
   0xb   :  { %v2732_v58 = vpack.c.bf16 %v51_v55, %v49_v53  ;;  %v53_v60 = vld [vmem:[%s3244_s3 + $0x20] sm:$0xff]  ;;  %1931 = vmatprep.subr.bf16.mxu1 %v2721_v54  ;;  %v60_v63 = vld [vmem:[%s3244_s3 + $0x58] sm:$0xff]  ;;  %v59_v5 = vld [vmem:[%s3244_s3 + $0x50] sm:$0xff] }
   0xc   :  { %v2750_v0 = vpack.c.bf16 %v55_v61, %v53_v60  ;;  %v2753_v1 = vpack.c.bf16 %v60_v63, %v58_v62  ;;  %v57_v2 = vld [vmem:[%s3244_s3 + $0x40] sm:$0xff]  ;;  %v62_v6 = vld [vmem:[%s3244_s3 + $0x68] sm:$0xff]  ;;  %v64_v7 = vld [vmem:[%s3244_s3 + $0x78] sm:$0xff] }
   0xd   :  { %1921 = vmatpush1.bf16.msra.mxu0 %v2633_v20  ;;  %1933 = vmatpush1.bf16.msra.mxu1 %v2732_v58  ;;  %v2768_v10 = vpack.c.bf16 %v59_v5, %v57_v2  ;;  %v2771_v11 = vpack.c.bf16 %v64_v7, %v62_v6  ;;  %v61_v12 = vld [vmem:[%s3244_s3 + $0x60] sm:$0xff]  ;;  %v63_v13 = vld [vmem:[%s3244_s3 + $0x70] sm:$0xff]  ;;  %v66_v16 = vld [vmem:[%s3244_s3 + $0x88] sm:$0xff] }
   0xe   :  { %1923 = vmatprep.subr.bf16.mxu0 %v2636_v21  ;;  %1935 = vmatprep.subr.bf16.mxu1 %v2734_v59  ;;  %v68_v17 = vld [vmem:[%s3244_s3 + $0x98] sm:$0xff]  ;;  %v2786_v18 = vpack.c.bf16 %v63_v13, %v61_v12  ;;  %v65_v22 = vld [vmem:[%s3244_s3 + $0x80] sm:$0xff]  ;;  %v67_v23 = vld [vmem:[%s3244_s3 + $0x90] sm:$0xff] }
   0xf   :  { %v2789_v19 = vpack.c.bf16 %v68_v17, %v66_v16  ;;  %v70_v24 = vld [vmem:[%s3244_s3 + $0xa8] sm:$0xff]  ;;  %v72_v25 = vld [vmem:[%s3244_s3 + $0xb8] sm:$0xff]  ;;  %v2804_v28 = vpack.c.bf16 %v67_v23, %v65_v22  ;;  %v71_v33 = vld [vmem:[%s3244_s3 + $0xb0] sm:$0xff] }
  0x10   :  { %v2807_v29 = vpack.c.bf16 %v72_v25, %v70_v24  ;;  %v74_v36 = vld [vmem:[%s3244_s3 + $0xc8] sm:$0xff]  ;;  %v77_v51 = vld [vmem:[%s3244_s3 + $0xe0] sm:$0xff]  ;;  %v79_v52 = vld [vmem:[%s3244_s3 + $0xf0] sm:$0xff] }
  0x11   :  { %1925 = vmatpush1.bf16.msra.mxu0 %v2651_v26  ;;  %1937 = vmatpush1.bf16.msra.mxu1 %v2750_v0  ;;  %v2852_v53 = vpack.c.bf16 %v79_v52, %v77_v51  ;;  %v81_v12 = vld [vmem:[%s3245_s4] sm:$0x3]  ;;  %s2531_s4 = smov 96  }
  0x12   :  { %1927 = vmatprep.subr.bf16.mxu0 %v2654_v27  ;;  %1939 = vmatprep.subr.bf16.mxu1 %v2753_v1  ;;  %v2901_v13 = vrot.slane %v81_v12, %v92_v35  ;;  %v2907_v24 = vrot.slane %v81_v12, %v88_v42 }
  0x15   :  { %1929 = vmatpush1.bf16.msra.mxu0 %v2663_v30  ;;  %1941 = vmatpush1.bf16.msra.mxu1 %v2768_v10 }
  0x16   :  { %1963 = vmatprep.subr.bf16.mxu0 %v2586_v4  ;;  %1943 = vmatprep.subr.bf16.mxu1 %v2771_v11 }
  0x18   :  { %1867 = vmatmul.mubr.msk.f32.vlgmr.msra.gmra.mrb[0].mxu0 %vm96_vm1, %v84_v32  ;;  %v69_v32 = vld [vmem:[%s3244_s3 + $0xa0] sm:$0xff] }
  0x19   :  { %1965 = vmatpush1.bf16.msra.mxu0 %v2597_v8  ;;  %391 = vmatprep.mubr.f32.mxu0 %v2527_v3 }
  0x1a   :  { %1967 = vmatprep.subr.bf16.mxu0 %v2599_v9  ;;  %1945 = vmatpush1.bf16.msra.mxu1 %v2786_v18 }
  0x1b   :  { %1947 = vmatprep.subr.bf16.mxu1 %v2789_v19 }
  0x1d   :  { %1969 = vmatpush1.bf16.msra.mxu0 %v2615_v14 }
  0x1e   :  { %1971 = vmatprep.subr.bf16.mxu0 %v2618_v15  ;;  %1949 = vmatpush1.bf16.msra.mxu1 %v2804_v28 }
  0x1f   :  { %1951 = vmatprep.subr.bf16.mxu1 %v2807_v29 }
  0x21   :  { %1973 = vmatpush1.bf16.msra.mxu0 %v2633_v20 }
  0x22   :  { %1975 = vmatprep.subr.bf16.mxu0 %v2636_v21 }
  0x25   :  { %1977 = vmatpush1.bf16.msra.mxu0 %v2651_v26 }
  0x26   :  { %1979 = vmatprep.subr.bf16.mxu0 %v2654_v27 }
  0x29   :  { %1981 = vmatpush1.bf16.msra.mxu0 %v2663_v30 }
  0x2a   :  { %2015 = vmatprep.subr.bf16.mxu0 %v2586_v4 }
  0xeb   :  { %v166_v38 = vpop.f32.mrb[0].mxu0 }
  0xec   :  { %v168_v39 = vpop.f32.mrb[1].mxu0  ;;  %v167_v44 = vadd.f32 %v166_v38, %v2705_v43  ;;  %v76_v38 = vld [vmem:[%s3244_s3 + $0xd8] sm:$0xff] }
  0xed   :  { %v2698_v40 = vadd.f32 %v168_v39, %v2695_v37  ;;  %v2822_v39 = vpack.c.bf16 %v71_v33, %v69_v32 }
  0xee   :  { %v1868_v45 = vmul.f32 -1.442695, %v167_v44  ;;  %v73_v44 = vld [vmem:[%s3244_s3 + $0xc0] sm:$0xff] }
  0xef   :  { %2334 = vtanh.f32 %v2698_v40  ;;  %1953 = vmatpush1.bf16.msra.mxu1 %v2822_v39  ;;  %v1869_v61 = vmul.f32 -1.442695, %v2698_v40 }
  0xf0   :  { %2336 = vpow2.f32 %v1868_v45  ;;  %v75_v45 = vld [vmem:[%s3244_s3 + $0xd0] sm:$0xff] }
  0xf9   :  { %v2335_v41 = vpop.eup %2334 }
  0xfa   :  { %186 = vrot.lane.b32.xlu0 %v2335_v41, %s2528_s21  ;;  %v2337_v46 = vpop.eup %2336  ;;  %v2825_v41 = vpack.c.bf16 %v76_v38, %v74_v36 }
  0xfb   :  { %v177_v47 = vadd.f32 1.0, %v2337_v46  ;;  %v78_v46 = vld [vmem:[%s3244_s3 + $0xe8] sm:$0xff] }
  0xfc   :  { %1955 = vmatprep.subr.bf16.mxu1 %v2825_v41 }
  0xfd   :  { %2338 = vrcp.f32 %v177_v47  ;;  %v80_v47 = vld [vmem:[%s3244_s3 + $0xf8] sm:$0xff]  ;;  %s2529_s3 = smov 112  }
 0x107   :  { %v2708_v48 = vpop.eup %2338 }
 0x108   :  { %v184_v55 = vmul.f32 0.0, %v2708_v48 }
 0x16c   :  { %v187_v49 = vpop.permute.xlu0 %186 }
 0x16d   :  { %v189_v50 = vmul.f32 %v2708_v48, %v187_v49  ;;  %v2840_v49 = vpack.c.bf16 %v75_v45, %v73_v44 }
 0x16f   :  { %191 = vrot.lane.b32.xlu0 %v189_v50, %s2528_s21  ;;  %v2843_v50 = vpack.c.bf16 %v80_v47, %v78_v46  ;;  %1957 = vmatpush1.bf16.msra.mxu1 %v2840_v49 }
 0x171   :  { %1959 = vmatprep.subr.bf16.mxu1 %v2843_v50 }
 0x173   :  { %1961 = vmatpush1.bf16.msra.mxu1 %v2852_v53 }
 0x174   :  { %1983 = vmatprep.subr.bf16.mxu1 %v2721_v54 }
 0x1e1   :  { %v192_v56 = vpop.permute.xlu0 %191 }
 0x1e2   :  { %v2858_v57 = vadd.f32 %v192_v56, %v184_v55 }
 0x1e4   :  { %2340 = vtanh.f32 %v2858_v57 }
 0x1e5   :  { %2342 = vpow2.f32 %v1869_v61 }
 0x1ee   :  { %v2341_v60 = vpop.eup %2340 }
 0x1ef   :  { %197 = vrot.lane.b32.xlu1 %v2341_v60, %s2528_s21  ;;  %v2343_v62 = vpop.eup %2342 }
 0x1f0   :  { %v178_v63 = vadd.f32 1.0, %v2343_v62 }
 0x1f2   :  { %2344 = vrcp.f32 %v178_v63 }
 0x1f3   :  { %316 = vrot.lane.b32.xlu1 %v2669_v31, %s2529_s3 }
 0x1fc   :  { %v2345_v2 = vpop.eup %2344 }
 0x261   :  { %v198_v5 = vpop.permute.xlu1 %197 }
 0x262   :  { %v200_v48 = vmul.f32 %v2345_v2, %v198_v5 }
 0x264   :  { %320 = vrot.lane.b32.xlu0 %v200_v48, %s2530_s14  ;;  %1870 = vmatmul.mubr.msk.f32.vlgmr.msra.gmra.mrb[0].mxu1 %vm201_vm2, %v200_v48 }
 0x265   :  { %1985 = vmatpush1.bf16.msra.mxu1 %v2732_v58  ;;  %497 = vmatprep.mubr.f32.mxu1 %v2527_v3  ;;  %v317_v40 = vpop.permute.xlu1 %316 }
 0x266   :  { %1987 = vmatprep.subr.bf16.mxu1 %v2734_v59 }
 0x269   :  { %1989 = vmatpush1.bf16.msra.mxu1 %v2750_v0 }
 0x26a   :  { %1991 = vmatprep.subr.bf16.mxu1 %v2753_v1 }
 0x26d   :  { %1993 = vmatpush1.bf16.msra.mxu1 %v2768_v10 }
 0x26e   :  { %1995 = vmatprep.subr.bf16.mxu1 %v2771_v11 }
 0x271   :  { %1997 = vmatpush1.bf16.msra.mxu1 %v2786_v18 }
 0x272   :  { %1999 = vmatprep.subr.bf16.mxu1 %v2789_v19 }
 0x275   :  { %2001 = vmatpush1.bf16.msra.mxu1 %v2804_v28 }
 0x276   :  { %2003 = vmatprep.subr.bf16.mxu1 %v2807_v29 }
 0x279   :  { %2005 = vmatpush1.bf16.msra.mxu1 %v2822_v39 }
 0x27a   :  { %2007 = vmatprep.subr.bf16.mxu1 %v2825_v41 }
 0x27d   :  { %2009 = vmatpush1.bf16.msra.mxu1 %v2840_v49 }
 0x27e   :  { %2011 = vmatprep.subr.bf16.mxu1 %v2843_v50 }
 0x281   :  { %2013 = vmatpush1.bf16.msra.mxu1 %v2852_v53 }
 0x282   :  { %2087 = vmatprep.subr.bf16.mxu1 %v2721_v54 }
 0x2d6   :  { %v321_v6 = vpop.permute.xlu0 %320 }
 0x2d7   :  { %v323_v7 = vsel %vm83_vm0, %v317_v40, %v321_v6 }
 0x2d8   :  { %1873 = vmatmul.mubr.msk.f32.vlgmr.msra.gmra.mrb[2].mxu0 %vm96_vm1, %v323_v7 }
 0x2d9   :  { %2017 = vmatpush1.bf16.msra.mxu0 %v2597_v8  ;;  %609 = vmatprep.mubr.f32.mxu0 %v2527_v3 }
 0x2da   :  { %2019 = vmatprep.subr.bf16.mxu0 %v2599_v9 }
 0x2dd   :  { %2021 = vmatpush1.bf16.msra.mxu0 %v2615_v14 }
 0x2de   :  { %2023 = vmatprep.subr.bf16.mxu0 %v2618_v15 }
 0x2e1   :  { %2025 = vmatpush1.bf16.msra.mxu0 %v2633_v20 }
 0x2e2   :  { %2027 = vmatprep.subr.bf16.mxu0 %v2636_v21 }
 0x2e5   :  { %2029 = vmatpush1.bf16.msra.mxu0 %v2651_v26 }
 0x2e6   :  { %2031 = vmatprep.subr.bf16.mxu0 %v2654_v27 }
 0x2e9   :  { %2033 = vmatpush1.bf16.msra.mxu0 %v2663_v30 }
 0x2ea   :  { %2035 = vmatprep.subr.bf16.mxu0 %v2721_v54 }
 0x337   :  { %v280_v16 = vpop.f32.mrb[0].mxu1 }
 0x338   :  { %v282_v17 = vpop.f32.mrb[1].mxu1  ;;  %v281_v25 = vadd.f32 %v280_v16, %v2907_v24 }
 0x339   :  { %v283_v22 = vadd.f32 %v282_v17, %v2901_v13 }
 0x33a   :  { %v1871_v32 = vmul.f32 -1.442695, %v281_v25 }
 0x33b   :  { %2346 = vtanh.f32 %v283_v22  ;;  %v1872_v48 = vmul.f32 -1.442695, %v283_v22 }
 0x33c   :  { %2348 = vpow2.f32 %v1871_v32 }
 0x345   :  { %v2347_v23 = vpop.eup %2346 }
 0x346   :  { %300 = vrot.lane.b32.xlu1 %v2347_v23, %s2528_s21  ;;  %v2349_v33 = vpop.eup %2348 }
 0x347   :  { %v291_v36 = vadd.f32 1.0, %v2349_v33 }
 0x349   :  { %2350 = vrcp.f32 %v291_v36 }
 0x353   :  { %v2351_v45 = vpop.eup %2350 }
 0x354   :  { %v298_v61 = vmul.f32 0.0, %v2351_v45 }
 0x3ab   :  { %v393_v35 = vpop.f32.mrb[2].mxu0 }
 0x3ac   :  { %v395_v38 = vpop.f32.mrb[3].mxu0  ;;  %v394_v34 = vadd.f32 %v393_v35, %v2705_v43 }
 0x3ad   :  { %v396_v44 = vadd.f32 %v395_v38, %v2695_v37 }
 0x3ae   :  { %v1874_v42 = vmul.f32 -1.442695, %v394_v34 }
 0x3af   :  { %2352 = vtanh.f32 %v396_v44  ;;  %v1875_v22 = vmul.f32 -1.442695, %v396_v44 }
 0x3b0   :  { %2354 = vpow2.f32 %v1874_v42 }
 0x3b8   :  { %v301_v46 = vpop.permute.xlu1 %300 }
 0x3b9   :  { %v2353_v47 = vpop.eup %2352  ;;  %v303_v51 = vmul.f32 %v2351_v45, %v301_v46 }
 0x3ba   :  { %413 = vrot.lane.b32.xlu0 %v2353_v47, %s2528_s21  ;;  %v2355_v52 = vpop.eup %2354 }
 0x3bb   :  { %305 = vrot.lane.b32.xlu1 %v303_v51, %s2528_s21  ;;  %v404_v55 = vadd.f32 1.0, %v2355_v52 }
 0x3bd   :  { %2356 = vrcp.f32 %v404_v55 }
 0x3c7   :  { %v2357_v56 = vpop.eup %2356 }
 0x3c8   :  { %v411_v7 = vmul.f32 %v2357_v56, %v2858_v57 }
 0x42c   :  { %v414_v60 = vpop.permute.xlu0 %413 }
 0x42d   :  { %v416_v62 = vmul.f32 %v2357_v56, %v414_v60  ;;  %v306_v63 = vpop.permute.xlu1 %305 }
 0x42e   :  { %v2914_v2 = vadd.f32 %v306_v63, %v298_v61 }
 0x42f   :  { %418 = vrot.lane.b32.xlu0 %v416_v62, %s2528_s21 }
 0x430   :  { %2358 = vtanh.f32 %v2914_v2 }
 0x431   :  { %2360 = vpow2.f32 %v1872_v48 }
 0x43a   :  { %v2359_v5 = vpop.eup %2358 }
 0x43b   :  { %311 = vrot.lane.b32.xlu1 %v2359_v5, %s2528_s21  ;;  %v2361_v40 = vpop.eup %2360 }
 0x43c   :  { %v292_v6 = vadd.f32 1.0, %v2361_v40 }
 0x43e   :  { %2362 = vrcp.f32 %v292_v6 }
 0x448   :  { %v2363_v17 = vpop.eup %2362 }
 0x4a1   :  { %v419_v12 = vpop.permute.xlu0 %418 }
 0x4a2   :  { %v2920_v16 = vadd.f32 %v419_v12, %v411_v7 }
 0x4a4   :  { %2364 = vtanh.f32 %v2920_v16 }
 0x4a5   :  { %2366 = vpow2.f32 %v1875_v22 }
 0x4ad   :  { %v312_v23 = vpop.permute.xlu1 %311 }
 0x4ae   :  { %v2365_v25 = vpop.eup %2364  ;;  %v314_v32 = vmul.f32 %v2363_v17, %v312_v23 }
 0x4af   :  { %424 = vrot.lane.b32.xlu0 %v2365_v25, %s2528_s21  ;;  %v2367_v57 = vpop.eup %2366 }
 0x4b0   :  { %429 = vrot.lane.b32.xlu1 %v314_v32, %s2528_s21  ;;  %v405_v33 = vadd.f32 1.0, %v2367_v57 }
 0x4b2   :  { %2368 = vrcp.f32 %v405_v33 }
 0x4b3   :  { %534 = vrot.lane.b32.xlu0 %v2669_v31, %s2531_s4 }
 0x4bc   :  { %v2369_v36 = vpop.eup %2368 }
 0x521   :  { %v425_v35 = vpop.permute.xlu0 %424 }
 0x522   :  { %v427_v38 = vmul.f32 %v2369_v36, %v425_v35  ;;  %v430_v45 = vpop.permute.xlu1 %429 }
 0x524   :  { %v432_v46 = vsel %vm201_vm2, %v427_v38, %v430_v45  ;;  %538 = vrot.lane.b32.xlu1 %v427_v38, %s2530_s14 }
 0x525   :  { %498 = vmatmul.mubr.f32.vlgmr.msra.gmra.mrb[2].mxu1 %v432_v46  ;;  %v535_v44 = vpop.permute.xlu0 %534 }
 0x526   :  { %2089 = vmatpush1.bf16.msra.mxu1 %v2732_v58  ;;  %933 = vmatprep.mubr.f32.mxu1 %v2527_v3 }
 0x527   :  { %2091 = vmatprep.subr.bf16.mxu1 %v2734_v59 }
 0x52a   :  { %2093 = vmatpush1.bf16.msra.mxu1 %v2750_v0 }
 0x52b   :  { %2095 = vmatprep.subr.bf16.mxu1 %v2753_v1 }
 0x52e   :  { %2097 = vmatpush1.bf16.msra.mxu1 %v2768_v10 }
 0x52f   :  { %2099 = vmatprep.subr.bf16.mxu1 %v2771_v11 }
 0x532   :  { %2101 = vmatpush1.bf16.msra.mxu1 %v2786_v18 }
 0x533   :  { %2103 = vmatprep.subr.bf16.mxu1 %v2789_v19 }
 0x536   :  { %2105 = vmatpush1.bf16.msra.mxu1 %v2804_v28 }
 0x537   :  { %2107 = vmatprep.subr.bf16.mxu1 %v2807_v29 }
 0x53a   :  { %2109 = vmatpush1.bf16.msra.mxu1 %v2822_v39 }
 0x53b   :  { %2111 = vmatprep.subr.bf16.mxu1 %v2825_v41 }
 0x53e   :  { %2113 = vmatpush1.bf16.msra.mxu1 %v2840_v49 }
 0x53f   :  { %2115 = vmatprep.subr.bf16.mxu1 %v2843_v50 }
 0x542   :  { %2117 = vmatpush1.bf16.msra.mxu1 %v2852_v53 }
 0x543   :  { %2171 = vmatprep.subr.bf16.mxu1 %v2586_v4 }
 0x596   :  { %v539_v47 = vpop.permute.xlu1 %538 }
 0x597   :  { %v541_v51 = vsel %vm83_vm0, %v535_v44, %v539_v47 }
 0x598   :  { %1878 = vmatmul.mubr.msk.f32.vlgmr.msra.gmra.mrb[4].mxu0 %vm96_vm1, %v541_v51 }
 0x599   :  { %2037 = vmatpush1.bf16.msra.mxu0 %v2732_v58  ;;  %715 = vmatprep.mubr.f32.mxu0 %v2527_v3 }
 0x59a   :  { %2039 = vmatprep.subr.bf16.mxu0 %v2734_v59 }
 0x59d   :  { %2041 = vmatpush1.bf16.msra.mxu0 %v2750_v0 }
 0x59e   :  { %2043 = vmatprep.subr.bf16.mxu0 %v2753_v1 }
 0x5a1   :  { %2045 = vmatpush1.bf16.msra.mxu0 %v2768_v10 }
 0x5a2   :  { %2047 = vmatprep.subr.bf16.mxu0 %v2771_v11 }
 0x5a5   :  { %2049 = vmatpush1.bf16.msra.mxu0 %v2786_v18 }
 0x5a6   :  { %2051 = vmatprep.subr.bf16.mxu0 %v2789_v19 }
 0x5a9   :  { %2053 = vmatpush1.bf16.msra.mxu0 %v2804_v28 }
 0x5aa   :  { %2055 = vmatprep.subr.bf16.mxu0 %v2807_v29 }
 0x5ad   :  { %2057 = vmatpush1.bf16.msra.mxu0 %v2822_v39 }
 0x5ae   :  { %2059 = vmatprep.subr.bf16.mxu0 %v2825_v41 }
 0x5b1   :  { %2061 = vmatpush1.bf16.msra.mxu0 %v2840_v49 }
 0x5b2   :  { %2063 = vmatprep.subr.bf16.mxu0 %v2843_v50 }
 0x5b5   :  { %2065 = vmatpush1.bf16.msra.mxu0 %v2852_v53 }
 0x5b6   :  { %2067 = vmatprep.subr.bf16.mxu0 %v2586_v4 }
 0x5f8   :  { %v499_v34 = vpop.f32.mrb[2].mxu1 }
 0x5f9   :  { %v501_v42 = vpop.f32.mrb[3].mxu1  ;;  %v500_v56 = vadd.f32 %v499_v34, %v2907_v24 }
 0x5fa   :  { %v502_v52 = vadd.f32 %v501_v42, %v2901_v13 }
 0x5fb   :  { %v1876_v60 = vmul.f32 -1.442695, %v500_v56 }
 0x5fc   :  { %2370 = vtanh.f32 %v502_v52  ;;  %v1877_v46 = vmul.f32 -1.442695, %v502_v52 }
 0x5fd   :  { %2372 = vpow2.f32 %v1876_v60 }
 0x606   :  { %v2371_v55 = vpop.eup %2370 }
 0x607   :  { %519 = vrot.lane.b32.xlu0 %v2371_v55, %s2528_s21  ;;  %v2373_v61 = vpop.eup %2372 }
 0x608   :  { %v510_v62 = vadd.f32 1.0, %v2373_v61 }
 0x60a   :  { %2374 = vrcp.f32 %v510_v62 }
 0x614   :  { %v2375_v40 = vpop.eup %2374 }
 0x615   :  { %v517_v36 = vmul.f32 %v2375_v40, %v2914_v2 }
 0x66b   :  { %v611_v63 = vpop.f32.mrb[4].mxu0 }
 0x66c   :  { %v613_v5 = vpop.f32.mrb[5].mxu0  ;;  %v612_v17 = vadd.f32 %v611_v63, %v2705_v43 }
 0x66d   :  { %v614_v48 = vadd.f32 %v613_v5, %v2695_v37 }
 0x66e   :  { %v1879_v23 = vmul.f32 -1.442695, %v612_v17 }
 0x66f   :  { %2376 = vtanh.f32 %v614_v48  ;;  %v1880_v52 = vmul.f32 -1.442695, %v614_v48 }
 0x670   :  { %2378 = vpow2.f32 %v1879_v23 }
 0x679   :  { %v2377_v6 = vpop.eup %2376  ;;  %v520_v7 = vpop.permute.xlu0 %519 }
 0x67a   :  { %v522_v12 = vmul.f32 %v2375_v40, %v520_v7  ;;  %631 = vrot.lane.b32.xlu1 %v2377_v6, %s2528_s21  ;;  %v2379_v25 = vpop.eup %2378 }
 0x67b   :  { %v622_v32 = vadd.f32 1.0, %v2379_v25 }
 0x67c   :  { %524 = vrot.lane.b32.xlu0 %v522_v12, %s2528_s21 }
 0x67d   :  { %2380 = vrcp.f32 %v622_v32 }
 0x687   :  { %v2381_v22 = vpop.eup %2380 }
 0x688   :  { %v629_v51 = vmul.f32 %v2381_v22, %v2920_v16 }
 0x6ec   :  { %v632_v57 = vpop.permute.xlu1 %631 }
 0x6ed   :  { %v634_v33 = vmul.f32 %v2381_v22, %v632_v57 }
 0x6ee   :  { %v525_v35 = vpop.permute.xlu0 %524 }
 0x6ef   :  { %v2972_v38 = vadd.f32 %v525_v35, %v517_v36  ;;  %636 = vrot.lane.b32.xlu1 %v634_v33, %s2528_s21 }
 0x6f1   :  { %2382 = vtanh.f32 %v2972_v38 }
 0x6f2   :  { %2384 = vpow2.f32 %v1877_v46 }
 0x6fb   :  { %v2383_v45 = vpop.eup %2382 }
 0x6fc   :  { %530 = vrot.lane.b32.xlu0 %v2383_v45, %s2528_s21  ;;  %v2385_v44 = vpop.eup %2384 }
 0x6fd   :  { %v511_v47 = vadd.f32 1.0, %v2385_v44 }
 0x6ff   :  { %2386 = vrcp.f32 %v511_v47 }
 0x709   :  { %v2387_v2 = vpop.eup %2386 }
 0x761   :  { %v637_v34 = vpop.permute.xlu1 %636 }
 0x762   :  { %v2978_v42 = vadd.f32 %v637_v34, %v629_v51 }
 0x764   :  { %2388 = vtanh.f32 %v2978_v42 }
 0x765   :  { %2390 = vpow2.f32 %v1880_v52 }
 0x76e   :  { %v2389_v55 = vpop.eup %2388  ;;  %v531_v56 = vpop.permute.xlu0 %530 }
 0x76f   :  { %v533_v60 = vmul.f32 %v2387_v2, %v531_v56  ;;  %642 = vrot.lane.b32.xlu1 %v2389_v55, %s2528_s21  ;;  %v2391_v16 = vpop.eup %2390 }
 0x770   :  { %v623_v61 = vadd.f32 1.0, %v2391_v16 }
 0x771   :  { %647 = vrot.lane.b32.xlu0 %v533_v60, %s2528_s21 }
 0x772   :  { %2392 = vrcp.f32 %v623_v61 }
 0x773   :  { %752 = vrot.lane.b32.xlu1 %v2669_v31, %s2532_s17 }
 0x77c   :  { %v2393_v62 = vpop.eup %2392 }
 0x7e1   :  { %v643_v63 = vpop.permute.xlu1 %642 }
 0x7e2   :  { %v645_v5 = vmul.f32 %v2393_v62, %v643_v63 }
 0x7e3   :  { %v648_v40 = vpop.permute.xlu0 %647 }
 0x7e4   :  { %v650_v6 = vsel %vm201_vm2, %v645_v5, %v648_v40  ;;  %756 = vrot.lane.b32.xlu0 %v645_v5, %s2530_s14 }
 0x7e5   :  { %716 = vmatmul.mubr.f32.vlgmr.msra.gmra.mrb[6].mxu0 %v650_v6  ;;  %v753_v48 = vpop.permute.xlu1 %752 }
 0x7e6   :  { %2069 = vmatpush1.bf16.msra.mxu0 %v2597_v8  ;;  %827 = vmatprep.mubr.f32.mxu0 %v2527_v3 }
 0x7e7   :  { %2071 = vmatprep.subr.bf16.mxu0 %v2599_v9 }
 0x7ea   :  { %2073 = vmatpush1.bf16.msra.mxu0 %v2615_v14 }
 0x7eb   :  { %2075 = vmatprep.subr.bf16.mxu0 %v2618_v15 }
 0x7ee   :  { %2077 = vmatpush1.bf16.msra.mxu0 %v2633_v20 }
 0x7ef   :  { %2079 = vmatprep.subr.bf16.mxu0 %v2636_v21 }
 0x7f2   :  { %2081 = vmatpush1.bf16.msra.mxu0 %v2651_v26 }
 0x7f3   :  { %2083 = vmatprep.subr.bf16.mxu0 %v2654_v27 }
 0x7f6   :  { %2085 = vmatpush1.bf16.msra.mxu0 %v2663_v30 }
 0x7f7   :  { %2119 = vmatprep.subr.bf16.mxu0 %v2586_v4 }
 0x856   :  { %v757_v7 = vpop.permute.xlu0 %756 }
 0x857   :  { %v759_v12 = vsel %vm83_vm0, %v753_v48, %v757_v7 }
 0x858   :  { %1883 = vmatmul.mubr.msk.f32.vlgmr.msra.gmra.mrb[8].mxu0 %vm96_vm1, %v759_v12 }
 0x859   :  { %2121 = vmatpush1.bf16.msra.mxu0 %v2597_v8  ;;  %1045 = vmatprep.mubr.f32.mxu0 %v2527_v3 }
 0x85a   :  { %2123 = vmatprep.subr.bf16.mxu0 %v2599_v9 }
 0x85d   :  { %2125 = vmatpush1.bf16.msra.mxu0 %v2615_v14 }
 0x85e   :  { %2127 = vmatprep.subr.bf16.mxu0 %v2618_v15 }
 0x861   :  { %2129 = vmatpush1.bf16.msra.mxu0 %v2633_v20 }
 0x862   :  { %2131 = vmatprep.subr.bf16.mxu0 %v2636_v21 }
 0x865   :  { %2133 = vmatpush1.bf16.msra.mxu0 %v2651_v26 }
 0x866   :  { %2135 = vmatprep.subr.bf16.mxu0 %v2654_v27 }
 0x869   :  { %2137 = vmatpush1.bf16.msra.mxu0 %v2663_v30 }
 0x86a   :  { %2139 = vmatprep.subr.bf16.mxu0 %v2721_v54 }
 0x8b8   :  { %v717_v17 = vpop.f32.mrb[6].mxu0 }
 0x8b9   :  { %v719_v23 = vpop.f32.mrb[7].mxu0  ;;  %v718_v22 = vadd.f32 %v717_v17, %v2907_v24 }
 0x8ba   :  { %v720_v25 = vadd.f32 %v719_v23, %v2901_v13 }
 0x8bb   :  { %v1881_v57 = vmul.f32 -1.442695, %v718_v22 }
 0x8bc   :  { %2394 = vtanh.f32 %v720_v25  ;;  %v1882_v6 = vmul.f32 -1.442695, %v720_v25 }
 0x8bd   :  { %2396 = vpow2.f32 %v1881_v57 }
 0x8c6   :  { %v2395_v32 = vpop.eup %2394 }
 0x8c7   :  { %737 = vrot.lane.b32.xlu1 %v2395_v32, %s2528_s21  ;;  %v2397_v33 = vpop.eup %2396 }
 0x8c8   :  { %v728_v36 = vadd.f32 1.0, %v2397_v33 }
 0x8ca   :  { %2398 = vrcp.f32 %v728_v36 }
 0x8d4   :  { %v2399_v44 = vpop.eup %2398 }
 0x8d5   :  { %v735_v62 = vmul.f32 %v2399_v44, %v2972_v38 }
 0x92b   :  { %v829_v35 = vpop.f32.mrb[8].mxu0 }
 0x92c   :  { %v831_v45 = vpop.f32.mrb[9].mxu0  ;;  %v830_v2 = vadd.f32 %v829_v35, %v2705_v43 }
 0x92d   :  { %v832_v46 = vadd.f32 %v831_v45, %v2695_v37 }
 0x92e   :  { %v1884_v55 = vmul.f32 -1.442695, %v830_v2 }
 0x92f   :  { %2400 = vtanh.f32 %v832_v46  ;;  %v1885_v25 = vmul.f32 -1.442695, %v832_v46 }
 0x930   :  { %2402 = vpow2.f32 %v1884_v55 }
 0x939   :  { %v2401_v47 = vpop.eup %2400  ;;  %v738_v51 = vpop.permute.xlu1 %737 }
 0x93a   :  { %v740_v34 = vmul.f32 %v2399_v44, %v738_v51  ;;  %849 = vrot.lane.b32.xlu0 %v2401_v47, %s2528_s21  ;;  %v2403_v56 = vpop.eup %2402 }
 0x93b   :  { %v840_v60 = vadd.f32 1.0, %v2403_v56 }
 0x93c   :  { %742 = vrot.lane.b32.xlu1 %v740_v34, %s2528_s21 }
 0x93d   :  { %2404 = vrcp.f32 %v840_v60 }
 0x947   :  { %v2405_v52 = vpop.eup %2404 }
 0x948   :  { %v847_v12 = vmul.f32 %v2405_v52, %v2978_v42 }
 0x9ac   :  { %v850_v16 = vpop.permute.xlu0 %849 }
 0x9ad   :  { %v852_v61 = vmul.f32 %v2405_v52, %v850_v16 }
 0x9ae   :  { %v743_v63 = vpop.permute.xlu1 %742 }
 0x9af   :  { %v3018_v5 = vadd.f32 %v743_v63, %v735_v62  ;;  %854 = vrot.lane.b32.xlu0 %v852_v61, %s2528_s21 }
 0x9b1   :  { %2406 = vtanh.f32 %v3018_v5 }
 0x9b2   :  { %2408 = vpow2.f32 %v1882_v6 }
 0x9bb   :  { %v2407_v40 = vpop.eup %2406 }
 0x9bc   :  { %748 = vrot.lane.b32.xlu1 %v2407_v40, %s2528_s21  ;;  %v2409_v48 = vpop.eup %2408 }
 0x9bd   :  { %v729_v7 = vadd.f32 1.0, %v2409_v48 }
 0x9bf   :  { %2410 = vrcp.f32 %v729_v7 }
 0x9c9   :  { %v2411_v38 = vpop.eup %2410 }
 0xa21   :  { %v855_v17 = vpop.permute.xlu0 %854 }
 0xa22   :  { %v3024_v23 = vadd.f32 %v855_v17, %v847_v12 }
 0xa24   :  { %2412 = vtanh.f32 %v3024_v23 }
 0xa25   :  { %2414 = vpow2.f32 %v1885_v25 }
 0xa2e   :  { %v2413_v32 = vpop.eup %2412  ;;  %v749_v22 = vpop.permute.xlu1 %748 }
 0xa2f   :  { %v751_v57 = vmul.f32 %v2411_v38, %v749_v22  ;;  %860 = vrot.lane.b32.xlu0 %v2413_v32, %s2528_s21  ;;  %v2415_v42 = vpop.eup %2414 }
 0xa30   :  { %v841_v33 = vadd.f32 1.0, %v2415_v42 }
 0xa31   :  { %865 = vrot.lane.b32.xlu1 %v751_v57, %s2528_s21 }
 0xa32   :  { %2416 = vrcp.f32 %v841_v33 }
 0xa33   :  { %970 = vrot.lane.b32.xlu0 %v2669_v31, %s2528_s21 }
 0xa3c   :  { %v2417_v36 = vpop.eup %2416 }
 0xaa1   :  { %v861_v35 = vpop.permute.xlu0 %860 }
 0xaa2   :  { %v863_v45 = vmul.f32 %v2417_v36, %v861_v35 }
 0xaa3   :  { %v866_v44 = vpop.permute.xlu1 %865 }
 0xaa4   :  { %v868_v47 = vsel %vm201_vm2, %v863_v45, %v866_v44  ;;  %974 = vrot.lane.b32.xlu1 %v863_v45, %s2530_s14 }
 0xaa5   :  { %934 = vmatmul.mubr.f32.vlgmr.msra.gmra.mrb[4].mxu1 %v868_v47  ;;  %v971_v31 = vpop.permute.xlu0 %970 }
 0xaa6   :  { %2173 = vmatpush1.bf16.msra.mxu1 %v2597_v8  ;;  %1263 = vmatprep.mubr.f32.mxu1 %v2527_v3 }
 0xaa7   :  { %2175 = vmatprep.subr.bf16.mxu1 %v2599_v9 }
 0xaaa   :  { %2177 = vmatpush1.bf16.msra.mxu1 %v2615_v14 }
 0xaab   :  { %2179 = vmatprep.subr.bf16.mxu1 %v2618_v15 }
 0xaae   :  { %2181 = vmatpush1.bf16.msra.mxu1 %v2633_v20 }
 0xaaf   :  { %2183 = vmatprep.subr.bf16.mxu1 %v2636_v21 }
 0xab2   :  { %2185 = vmatpush1.bf16.msra.mxu1 %v2651_v26 }
 0xab3   :  { %2187 = vmatprep.subr.bf16.mxu1 %v2654_v27 }
 0xab6   :  { %2189 = vmatpush1.bf16.msra.mxu1 %v2663_v30 }
 0xab7   :  { %2191 = vmatprep.subr.bf16.mxu1 %v2721_v54 }
 0xb16   :  { %v975_v46 = vpop.permute.xlu1 %974 }
 0xb17   :  { %v977_v51 = vsel %vm83_vm0, %v971_v31, %v975_v46 }
 0xb18   :  { %1888 = vmatmul.mubr.msk.f32.vlgmr.msra.gmra.mrb[10].mxu0 %vm96_vm1, %v977_v51 }
 0xb19   :  { %2141 = vmatpush1.bf16.msra.mxu0 %v2732_v58  ;;  %1151 = vmatprep.mubr.f32.mxu0 %v2527_v3 }
 0xb1a   :  { %2143 = vmatprep.subr.bf16.mxu0 %v2734_v59 }
 0xb1d   :  { %2145 = vmatpush1.bf16.msra.mxu0 %v2750_v0 }
 0xb1e   :  { %2147 = vmatprep.subr.bf16.mxu0 %v2753_v1 }
 0xb21   :  { %2149 = vmatpush1.bf16.msra.mxu0 %v2768_v10 }
 0xb22   :  { %2151 = vmatprep.subr.bf16.mxu0 %v2771_v11 }
 0xb25   :  { %2153 = vmatpush1.bf16.msra.mxu0 %v2786_v18 }
 0xb26   :  { %2155 = vmatprep.subr.bf16.mxu0 %v2789_v19 }
 0xb29   :  { %2157 = vmatpush1.bf16.msra.mxu0 %v2804_v28 }
 0xb2a   :  { %2159 = vmatprep.subr.bf16.mxu0 %v2807_v29 }
 0xb2d   :  { %2161 = vmatpush1.bf16.msra.mxu0 %v2822_v39 }
 0xb2e   :  { %2163 = vmatprep.subr.bf16.mxu0 %v2825_v41 }
 0xb31   :  { %2165 = vmatpush1.bf16.msra.mxu0 %v2840_v49 }
 0xb32   :  { %2167 = vmatprep.subr.bf16.mxu0 %v2843_v50 }
 0xb35   :  { %2169 = vmatpush1.bf16.msra.mxu0 %v2852_v53 }
 0xb36   :  { %2223 = vmatprep.subr.bf16.mxu0 %v2586_v4 }
 0xb78   :  { %v935_v34 = vpop.f32.mrb[4].mxu1 }
 0xb79   :  { %v937_v2 = vpop.f32.mrb[5].mxu1  ;;  %v936_v60 = vadd.f32 %v935_v34, %v2907_v24 }
 0xb7a   :  { %v938_v55 = vadd.f32 %v937_v2, %v2901_v13 }
 0xb7b   :  { %v1886_v52 = vmul.f32 -1.442695, %v936_v60 }
 0xb7c   :  { %2418 = vtanh.f32 %v938_v55  ;;  %v1887_v44 = vmul.f32 -1.442695, %v938_v55  ;;  %v3085_v55 = vld [vmem:[%s3242_s0] sm:$0xff]  ;;  %s2534_s0 = smov 32  }
 0xb7d   :  { %2420 = vpow2.f32 %v1886_v52 }
 0xb86   :  { %v2419_v56 = vpop.eup %2418 }
 0xb87   :  { %955 = vrot.lane.b32.xlu0 %v2419_v56, %s2528_s21  ;;  %v2421_v16 = vpop.eup %2420 }
 0xb88   :  { %v946_v61 = vadd.f32 1.0, %v2421_v16 }
 0xb8a   :  { %2422 = vrcp.f32 %v946_v61 }
 0xb94   :  { %v2423_v6 = vpop.eup %2422 }
 0xb95   :  { %v953_v33 = vmul.f32 %v2423_v6, %v3018_v5 }
 0xbeb   :  { %v1047_v62 = vpop.f32.mrb[10].mxu0 }
 0xbec   :  { %v1049_v63 = vpop.f32.mrb[11].mxu0  ;;  %v1048_v17 = vadd.f32 %v1047_v62, %v2705_v43 }
 0xbed   :  { %v1050_v40 = vadd.f32 %v1049_v63, %v2695_v37 }
 0xbee   :  { %v1889_v38 = vmul.f32 -1.442695, %v1048_v17 }
 0xbef   :  { %2424 = vtanh.f32 %v1050_v40 }
 0xbf0   :  { %2426 = vpow2.f32 %v1889_v38 }
 0xbf9   :  { %v2425_v48 = vpop.eup %2424  ;;  %v956_v7 = vpop.permute.xlu0 %955 }
 0xbfa   :  { %v958_v12 = vmul.f32 %v2423_v6, %v956_v7  ;;  %1067 = vrot.lane.b32.xlu1 %v2425_v48, %s2528_s21  ;;  %v2427_v32 = vpop.eup %2426 }
 0xbfb   :  { %v1058_v22 = vadd.f32 1.0, %v2427_v32 }
 0xbfc   :  { %960 = vrot.lane.b32.xlu0 %v958_v12, %s2528_s21 }
 0xbfd   :  { %2428 = vrcp.f32 %v1058_v22 }
 0xc07   :  { %v2429_v57 = vpop.eup %2428 }
 0xc08   :  { %v1065_v46 = vmul.f32 %v2429_v57, %v3024_v23  ;;  %v1890_v23 = vmul.f32 -1.442695, %v1050_v40 }
 0xc6c   :  { %v1068_v25 = vpop.permute.xlu1 %1067 }
 0xc6d   :  { %v1070_v42 = vmul.f32 %v2429_v57, %v1068_v25 }
 0xc6e   :  { %v961_v36 = vpop.permute.xlu0 %960 }
 0xc6f   :  { %v3071_v35 = vadd.f32 %v961_v36, %v953_v33  ;;  %1072 = vrot.lane.b32.xlu1 %v1070_v42, %s2528_s21 }
 0xc71   :  { %2430 = vtanh.f32 %v3071_v35 }
 0xc72   :  { %2432 = vpow2.f32 %v1887_v44 }
 0xc7b   :  { %v2431_v45 = vpop.eup %2430 }
 0xc7c   :  { %966 = vrot.lane.b32.xlu0 %v2431_v45, %s2528_s21  ;;  %v2433_v47 = vpop.eup %2432 }
 0xc7d   :  { %v947_v31 = vadd.f32 1.0, %v2433_v47 }
 0xc7f   :  { %2434 = vrcp.f32 %v947_v31 }
 0xc89   :  { %v2435_v5 = vpop.eup %2434 }
 0xce1   :  { %v1073_v51 = vpop.permute.xlu1 %1072 }
 0xce2   :  { %v3077_v34 = vadd.f32 %v1073_v51, %v1065_v46 }
 0xce4   :  { %2436 = vtanh.f32 %v3077_v34 }
 0xce5   :  { %2438 = vpow2.f32 %v1890_v23 }
 0xcee   :  { %v2437_v2 = vpop.eup %2436  ;;  %v967_v56 = vpop.permute.xlu0 %966 }
 0xcef   :  { %v969_v60 = vmul.f32 %v2435_v5, %v967_v56  ;;  %1078 = vrot.lane.b32.xlu1 %v2437_v2, %s2528_s21  ;;  %v2439_v52 = vpop.eup %2438 }
 0xcf0   :  { %v1059_v16 = vadd.f32 1.0, %v2439_v52 }
 0xcf1   :  { %1083 = vrot.lane.b32.xlu0 %v969_v60, %s2528_s21 }
 0xcf2   :  { %2440 = vrcp.f32 %v1059_v16 }
 0xcf3   :  { %1188 = vrot.lane.b32.xlu1 %v3085_v55, %s2533_s1 }
 0xcfc   :  { %v2441_v61 = vpop.eup %2440 }
 0xd61   :  { %v1079_v62 = vpop.permute.xlu1 %1078 }
 0xd62   :  { %v1081_v63 = vmul.f32 %v2441_v61, %v1079_v62 }
 0xd63   :  { %v1084_v6 = vpop.permute.xlu0 %1083 }
 0xd64   :  { %v1086_v48 = vsel %vm201_vm2, %v1081_v63, %v1084_v6  ;;  %1192 = vrot.lane.b32.xlu0 %v1081_v63, %s2530_s14 }
 0xd65   :  { %1152 = vmatmul.mubr.f32.vlgmr.msra.gmra.mrb[12].mxu0 %v1086_v48  ;;  %v1189_v40 = vpop.permute.xlu1 %1188 }
 0xd66   :  { %2225 = vmatpush1.bf16.msra.mxu0 %v2597_v8  ;;  %1481 = vmatprep.mubr.f32.mxu0 %v2527_v3 }
 0xd67   :  { %2227 = vmatprep.subr.bf16.mxu0 %v2599_v9 }
 0xd6a   :  { %2229 = vmatpush1.bf16.msra.mxu0 %v2615_v14 }
 0xd6b   :  { %2231 = vmatprep.subr.bf16.mxu0 %v2618_v15 }
 0xd6e   :  { %2233 = vmatpush1.bf16.msra.mxu0 %v2633_v20 }
 0xd6f   :  { %2235 = vmatprep.subr.bf16.mxu0 %v2636_v21 }
 0xd72   :  { %2237 = vmatpush1.bf16.msra.mxu0 %v2651_v26 }
 0xd73   :  { %2239 = vmatprep.subr.bf16.mxu0 %v2654_v27 }
 0xd76   :  { %2241 = vmatpush1.bf16.msra.mxu0 %v2663_v30 }
 0xd77   :  { %2243 = vmatprep.subr.bf16.mxu0 %v2721_v54 }
 0xdd6   :  { %v1193_v7 = vpop.permute.xlu0 %1192 }
 0xdd7   :  { %v1195_v12 = vsel %vm83_vm0, %v1189_v40, %v1193_v7 }
 0xdd8   :  { %1893 = vmatmul.mubr.msk.f32.vlgmr.msra.gmra.mrb[6].mxu1 %vm96_vm1, %v1195_v12 }
 0xdd9   :  { %2193 = vmatpush1.bf16.msra.mxu1 %v2732_v58  ;;  %1369 = vmatprep.mubr.f32.mxu1 %v2527_v3 }
 0xdda   :  { %2195 = vmatprep.subr.bf16.mxu1 %v2734_v59 }
 0xddd   :  { %2197 = vmatpush1.bf16.msra.mxu1 %v2750_v0 }
 0xdde   :  { %2199 = vmatprep.subr.bf16.mxu1 %v2753_v1 }
 0xde1   :  { %2201 = vmatpush1.bf16.msra.mxu1 %v2768_v10 }
 0xde2   :  { %2203 = vmatprep.subr.bf16.mxu1 %v2771_v11 }
 0xde5   :  { %2205 = vmatpush1.bf16.msra.mxu1 %v2786_v18 }
 0xde6   :  { %2207 = vmatprep.subr.bf16.mxu1 %v2789_v19 }
 0xde9   :  { %2209 = vmatpush1.bf16.msra.mxu1 %v2804_v28 }
 0xdea   :  { %2211 = vmatprep.subr.bf16.mxu1 %v2807_v29 }
 0xded   :  { %2213 = vmatpush1.bf16.msra.mxu1 %v2822_v39 }
 0xdee   :  { %2215 = vmatprep.subr.bf16.mxu1 %v2825_v41 }
 0xdf1   :  { %2217 = vmatpush1.bf16.msra.mxu1 %v2840_v49 }
 0xdf2   :  { %2219 = vmatprep.subr.bf16.mxu1 %v2843_v50 }
 0xdf5   :  { %2221 = vmatpush1.bf16.msra.mxu1 %v2852_v53 }
 0xdf6   :  { %2275 = vmatprep.subr.bf16.mxu1 %v2586_v4 }
 0xe38   :  { %v1153_v17 = vpop.f32.mrb[12].mxu0 }
 0xe39   :  { %v1155_v38 = vpop.f32.mrb[13].mxu0  ;;  %v1154_v57 = vadd.f32 %v1153_v17, %v2907_v24 }
 0xe3a   :  { %v1156_v32 = vadd.f32 %v1155_v38, %v2901_v13 }
 0xe3b   :  { %v1891_v25 = vmul.f32 -1.442695, %v1154_v57 }
 0xe3c   :  { %2442 = vtanh.f32 %v1156_v32  ;;  %v1892_v6 = vmul.f32 -1.442695, %v1156_v32 }
 0xe3d   :  { %2444 = vpow2.f32 %v1891_v25 }
 0xe46   :  { %v2443_v22 = vpop.eup %2442 }
 0xe47   :  { %1173 = vrot.lane.b32.xlu1 %v2443_v22, %s2528_s21  ;;  %v2445_v42 = vpop.eup %2444 }
 0xe48   :  { %v1164_v33 = vadd.f32 1.0, %v2445_v42 }
 0xe4a   :  { %2446 = vrcp.f32 %v1164_v33 }
 0xe54   :  { %v2447_v4 = vpop.eup %2446 }
 0xe55   :  { %v1171_v16 = vmul.f32 %v2447_v4, %v3071_v35 }
 0xeab   :  { %v1265_v36 = vpop.f32.mrb[6].mxu1 }
 0xeac   :  { %v1267_v45 = vpop.f32.mrb[7].mxu1  ;;  %v1266_v51 = vadd.f32 %v1265_v36, %v2705_v43 }
 0xead   :  { %v1268_v44 = vadd.f32 %v1267_v45, %v2695_v37 }
 0xeae   :  { %v1894_v5 = vmul.f32 -1.442695, %v1266_v51 }
 0xeaf   :  { %2448 = vtanh.f32 %v1268_v44  ;;  %v1895_v32 = vmul.f32 -1.442695, %v1268_v44 }
 0xeb0   :  { %2450 = vpow2.f32 %v1894_v5 }
 0xeb9   :  { %v2449_v47 = vpop.eup %2448  ;;  %v1174_v31 = vpop.permute.xlu1 %1173 }
 0xeba   :  { %v1176_v46 = vmul.f32 %v2447_v4, %v1174_v31  ;;  %1285 = vrot.lane.b32.xlu0 %v2449_v47, %s2528_s21  ;;  %v2451_v2 = vpop.eup %2450 }
 0xebb   :  { %v1276_v56 = vadd.f32 1.0, %v2451_v2 }
 0xebc   :  { %1178 = vrot.lane.b32.xlu1 %v1176_v46, %s2528_s21 }
 0xebd   :  { %2452 = vrcp.f32 %v1276_v56 }
 0xec7   :  { %v2453_v60 = vpop.eup %2452 }
 0xec8   :  { %v1283_v7 = vmul.f32 %v2453_v60, %v3077_v34 }
 0xf2c   :  { %v1286_v23 = vpop.permute.xlu0 %1285 }
 0xf2d   :  { %v1288_v52 = vmul.f32 %v2453_v60, %v1286_v23 }
 0xf2e   :  { %v1179_v61 = vpop.permute.xlu1 %1178 }
 0xf2f   :  { %v3128_v62 = vadd.f32 %v1179_v61, %v1171_v16  ;;  %1290 = vrot.lane.b32.xlu0 %v1288_v52, %s2528_s21 }
 0xf31   :  { %2454 = vtanh.f32 %v3128_v62 }
 0xf32   :  { %2456 = vpow2.f32 %v1892_v6 }
 0xf3b   :  { %v2455_v63 = vpop.eup %2454 }
 0xf3c   :  { %1184 = vrot.lane.b32.xlu1 %v2455_v63, %s2528_s21  ;;  %v2457_v48 = vpop.eup %2456 }
 0xf3d   :  { %v1165_v40 = vadd.f32 1.0, %v2457_v48 }
 0xf3f   :  { %2458 = vrcp.f32 %v1165_v40 }
 0xf49   :  { %v2459_v35 = vpop.eup %2458 }
 0xfa1   :  { %v1291_v12 = vpop.permute.xlu0 %1290 }
 0xfa2   :  { %v3134_v17 = vadd.f32 %v1291_v12, %v1283_v7 }
 0xfa4   :  { %2460 = vtanh.f32 %v3134_v17 }
 0xfa5   :  { %2462 = vpow2.f32 %v1895_v32 }
 0xfae   :  { %v2461_v38 = vpop.eup %2460  ;;  %v1185_v22 = vpop.permute.xlu1 %1184 }
 0xfaf   :  { %v1187_v57 = vmul.f32 %v2459_v35, %v1185_v22  ;;  %1296 = vrot.lane.b32.xlu0 %v2461_v38, %s2528_s21  ;;  %v2463_v34 = vpop.eup %2462 }
 0xfb0   :  { %v1277_v25 = vadd.f32 1.0, %v2463_v34 }
 0xfb1   :  { %1301 = vrot.lane.b32.xlu1 %v1187_v57, %s2528_s21 }
 0xfb2   :  { %2464 = vrcp.f32 %v1277_v25 }
 0xfb3   :  { %1406 = vrot.lane.b32.xlu0 %v3085_v55, %s2534_s0 }
 0xfbc   :  { %v2465_v42 = vpop.eup %2464 }
0x1021   :  { %v1297_v33 = vpop.permute.xlu0 %1296 }
0x1022   :  { %v1299_v36 = vmul.f32 %v2465_v42, %v1297_v33 }
0x1023   :  { %v1302_v45 = vpop.permute.xlu1 %1301 }
0x1024   :  { %v1304_v4 = vsel %vm201_vm2, %v1299_v36, %v1302_v45  ;;  %1410 = vrot.lane.b32.xlu1 %v1299_v36, %s2530_s14 }
0x1025   :  { %1370 = vmatmul.mubr.f32.vlgmr.msra.gmra.mrb[8].mxu1 %v1304_v4 }
0x1026   :  { %2277 = vmatpush1.bf16.msra.mxu1 %v2597_v8  ;;  %1699 = vmatprep.mubr.f32.mxu1 %v2527_v3  ;;  %v1407_v8 = vpop.permute.xlu0 %1406 }
0x1027   :  { %2279 = vmatprep.subr.bf16.mxu1 %v2599_v9 }
0x102a   :  { %2281 = vmatpush1.bf16.msra.mxu1 %v2615_v14 }
0x102b   :  { %2283 = vmatprep.subr.bf16.mxu1 %v2618_v15 }
0x102e   :  { %2285 = vmatpush1.bf16.msra.mxu1 %v2633_v20 }
0x102f   :  { %2287 = vmatprep.subr.bf16.mxu1 %v2636_v21 }
0x1032   :  { %2289 = vmatpush1.bf16.msra.mxu1 %v2651_v26 }
0x1033   :  { %2291 = vmatprep.subr.bf16.mxu1 %v2654_v27 }
0x1036   :  { %2293 = vmatpush1.bf16.msra.mxu1 %v2663_v30 }
0x1037   :  { %2295 = vmatprep.subr.bf16.mxu1 %v2721_v54 }
0x1096   :  { %v1411_v44 = vpop.permute.xlu1 %1410 }
0x1097   :  { %v1413_v9 = vsel %vm83_vm0, %v1407_v8, %v1411_v44 }
0x1098   :  { %1898 = vmatmul.mubr.msk.f32.vlgmr.msra.gmra.mrb[14].mxu0 %vm96_vm1, %v1413_v9 }
0x1099   :  { %2245 = vmatpush1.bf16.msra.mxu0 %v2732_v58  ;;  %1587 = vmatprep.mubr.f32.mxu0 %v2527_v3 }
0x109a   :  { %2247 = vmatprep.subr.bf16.mxu0 %v2734_v59 }
0x109d   :  { %2249 = vmatpush1.bf16.msra.mxu0 %v2750_v0 }
0x109e   :  { %2251 = vmatprep.subr.bf16.mxu0 %v2753_v1 }
0x10a1   :  { %2253 = vmatpush1.bf16.msra.mxu0 %v2768_v10 }
0x10a2   :  { %2255 = vmatprep.subr.bf16.mxu0 %v2771_v11 }
0x10a5   :  { %2257 = vmatpush1.bf16.msra.mxu0 %v2786_v18 }
0x10a6   :  { %2259 = vmatprep.subr.bf16.mxu0 %v2789_v19 }
0x10a9   :  { %2261 = vmatpush1.bf16.msra.mxu0 %v2804_v28 }
0x10aa   :  { %2263 = vmatprep.subr.bf16.mxu0 %v2807_v29 }
0x10ad   :  { %2265 = vmatpush1.bf16.msra.mxu0 %v2822_v39 }
0x10ae   :  { %2267 = vmatprep.subr.bf16.mxu0 %v2825_v41 }
0x10b1   :  { %2269 = vmatpush1.bf16.msra.mxu0 %v2840_v49 }
0x10b2   :  { %2271 = vmatprep.subr.bf16.mxu0 %v2843_v50 }
0x10b5   :  { %2273 = vmatpush1.bf16.msra.mxu0 %v2852_v53 }
0x10f8   :  { %v1371_v14 = vpop.f32.mrb[8].mxu1 }
0x10f9   :  { %v1373_v15 = vpop.f32.mrb[9].mxu1  ;;  %v1372_v26 = vadd.f32 %v1371_v14, %v2907_v24 }
0x10fa   :  { %v1374_v20 = vadd.f32 %v1373_v15, %v2901_v13 }
0x10fb   :  { %v1896_v27 = vmul.f32 -1.442695, %v1372_v26 }
0x10fc   :  { %2466 = vtanh.f32 %v1374_v20  ;;  %v1897_v35 = vmul.f32 -1.442695, %v1374_v20 }
0x10fd   :  { %2468 = vpow2.f32 %v1896_v27 }
0x1106   :  { %v2467_v21 = vpop.eup %2466 }
0x1107   :  { %1391 = vrot.lane.b32.xlu0 %v2467_v21, %s2528_s21  ;;  %v2469_v30 = vpop.eup %2468 }
0x1108   :  { %v1382_v54 = vadd.f32 1.0, %v2469_v30 }
0x110a   :  { %2470 = vrcp.f32 %v1382_v54 }
0x1114   :  { %v2471_v51 = vpop.eup %2470 }
0x1115   :  { %v1389_v48 = vmul.f32 %v2471_v51, %v3128_v62 }
0x116b   :  { %v1483_v47 = vpop.f32.mrb[14].mxu0 }
0x116c   :  { %v1485_v31 = vpop.f32.mrb[15].mxu0  ;;  %v1484_v60 = vadd.f32 %v1483_v47, %v2705_v43 }
0x116d   :  { %v1486_v46 = vadd.f32 %v1485_v31, %v2695_v37 }
0x116e   :  { %v1899_v23 = vmul.f32 -1.442695, %v1484_v60 }
0x116f   :  { %2472 = vtanh.f32 %v1486_v46  ;;  %v1900_v36 = vmul.f32 -1.442695, %v1486_v46 }
0x1170   :  { %2474 = vpow2.f32 %v1899_v23 }
0x1179   :  { %v2473_v5 = vpop.eup %2472  ;;  %v1392_v2 = vpop.permute.xlu0 %1391 }
0x117a   :  { %v1394_v56 = vmul.f32 %v2471_v51, %v1392_v2  ;;  %1503 = vrot.lane.b32.xlu1 %v2473_v5, %s2528_s21  ;;  %v2475_v52 = vpop.eup %2474 }
0x117b   :  { %v1494_v16 = vadd.f32 1.0, %v2475_v52 }
0x117c   :  { %1396 = vrot.lane.b32.xlu0 %v1394_v56, %s2528_s21 }
0x117d   :  { %2476 = vrcp.f32 %v1494_v16 }
0x1187   :  { %v2477_v61 = vpop.eup %2476 }
0x1188   :  { %v1501_v57 = vmul.f32 %v2477_v61, %v3134_v17 }
0x11ec   :  { %v1504_v63 = vpop.permute.xlu1 %1503 }
0x11ed   :  { %v1506_v6 = vmul.f32 %v2477_v61, %v1504_v63 }
0x11ee   :  { %v1397_v40 = vpop.permute.xlu0 %1396 }
0x11ef   :  { %v3179_v7 = vadd.f32 %v1397_v40, %v1389_v48  ;;  %1508 = vrot.lane.b32.xlu1 %v1506_v6, %s2528_s21 }
0x11f1   :  { %2478 = vtanh.f32 %v3179_v7 }
0x11f2   :  { %2480 = vpow2.f32 %v1897_v35 }
0x11fb   :  { %v2479_v12 = vpop.eup %2478 }
0x11fc   :  { %1402 = vrot.lane.b32.xlu0 %v2479_v12, %s2528_s21  ;;  %v2481_v38 = vpop.eup %2480 }
0x11fd   :  { %v1383_v22 = vadd.f32 1.0, %v2481_v38 }
0x11ff   :  { %2482 = vrcp.f32 %v1383_v22 }
0x1209   :  { %v2483_v62 = vpop.eup %2482 }
0x1261   :  { %v1509_v32 = vpop.permute.xlu1 %1508 }
0x1262   :  { %v3185_v34 = vadd.f32 %v1509_v32, %v1501_v57 }
0x1264   :  { %2484 = vtanh.f32 %v3185_v34 }
0x1265   :  { %2486 = vpow2.f32 %v1900_v36 }
0x126e   :  { %v2485_v25 = vpop.eup %2484  ;;  %v1403_v42 = vpop.permute.xlu0 %1402 }
0x126f   :  { %v1405_v33 = vmul.f32 %v2483_v62, %v1403_v42  ;;  %1514 = vrot.lane.b32.xlu1 %v2485_v25, %s2528_s21  ;;  %v2487_v17 = vpop.eup %2486 }
0x1270   :  { %v1495_v45 = vadd.f32 1.0, %v2487_v17 }
0x1271   :  { %1519 = vrot.lane.b32.xlu0 %v1405_v33, %s2528_s21 }
0x1272   :  { %2488 = vrcp.f32 %v1495_v45 }
0x1273   :  { %1624 = vrot.lane.b32.xlu1 %v3085_v55, %s2530_s14 }
0x127c   :  { %v2489_v4 = vpop.eup %2488 }
0x12e1   :  { %v1515_v8 = vpop.permute.xlu1 %1514 }
0x12e2   :  { %v1517_v44 = vmul.f32 %v2489_v4, %v1515_v8 }
0x12e3   :  { %v1520_v9 = vpop.permute.xlu0 %1519 }
0x12e4   :  { %v1522_v14 = vsel %vm201_vm2, %v1517_v44, %v1520_v9  ;;  %1628 = vrot.lane.b32.xlu0 %v1517_v44, %s2530_s14 }
0x12e5   :  { %1588 = vmatmul.mubr.f32.vlgmr.msra.gmra.mrb[16].mxu0 %v1522_v14  ;;  %v1625_v15 = vpop.permute.xlu1 %1624 }
0x1356   :  { %v1629_v20 = vpop.permute.xlu0 %1628 }
0x1357   :  { %v1631_v21 = vsel %vm83_vm0, %v1625_v15, %v1629_v20 }
0x1358   :  { %1903 = vmatmul.mubr.msk.f32.vlgmr.msra.gmra.mrb[10].mxu1 %vm96_vm1, %v1631_v21 }
0x1359   :  { %2297 = vmatpush1.bf16.msra.mxu1 %v2732_v58  ;;  %1805 = vmatprep.mubr.f32.mxu1 %v2527_v3 }
0x135a   :  { %2299 = vmatprep.subr.bf16.mxu1 %v2734_v59 }
0x135d   :  { %2301 = vmatpush1.bf16.msra.mxu1 %v2750_v0 }
0x135e   :  { %2303 = vmatprep.subr.bf16.mxu1 %v2753_v1 }
0x1361   :  { %2305 = vmatpush1.bf16.msra.mxu1 %v2768_v10 }
0x1362   :  { %2307 = vmatprep.subr.bf16.mxu1 %v2771_v11 }
0x1365   :  { %2309 = vmatpush1.bf16.msra.mxu1 %v2786_v18 }
0x1366   :  { %2311 = vmatprep.subr.bf16.mxu1 %v2789_v19 }
0x1369   :  { %2313 = vmatpush1.bf16.msra.mxu1 %v2804_v28 }
0x136a   :  { %2315 = vmatprep.subr.bf16.mxu1 %v2807_v29 }
0x136d   :  { %2317 = vmatpush1.bf16.msra.mxu1 %v2822_v39 }
0x136e   :  { %2319 = vmatprep.subr.bf16.mxu1 %v2825_v41 }
0x1371   :  { %2321 = vmatpush1.bf16.msra.mxu1 %v2840_v49 }
0x1372   :  { %2323 = vmatprep.subr.bf16.mxu1 %v2843_v50 }
0x1375   :  { %2325 = vmatpush1.bf16.msra.mxu1 %v2852_v53 }
0x13b8   :  { %v1589_v3 = vpop.f32.mrb[16].mxu0 }
0x13b9   :  { %v1591_v58 = vpop.f32.mrb[17].mxu0  ;;  %v1590_v1 = vadd.f32 %v1589_v3, %v2907_v24 }
0x13ba   :  { %v1592_v59 = vadd.f32 %v1591_v58, %v2901_v13  ;;  %v1908_v58 = vld [vmem:[%s3247_s5] ss:$0 sm:$0xff] }
0x13bb   :  { %v1901_v10 = vmul.f32 -1.442695, %v1590_v1 }
0x13bc   :  { %2490 = vtanh.f32 %v1592_v59  ;;  %v1902_v5 = vmul.f32 -1.442695, %v1592_v59 }
0x13bd   :  { %2492 = vpow2.f32 %v1901_v10 }
0x13c6   :  { %v2491_v0 = vpop.eup %2490 }
0x13c7   :  { %1609 = vrot.lane.b32.xlu1 %v2491_v0, %s2528_s21  ;;  %v2493_v11 = vpop.eup %2492 }
0x13c8   :  { %v1600_v18 = vadd.f32 1.0, %v2493_v11 }
0x13ca   :  { %2494 = vrcp.f32 %v1600_v18 }
0x13d4   :  { %v2495_v39 = vpop.eup %2494 }
0x13d5   :  { %v1607_v47 = vmul.f32 %v2495_v39, %v3179_v7 }
0x142b   :  { %v1701_v19 = vpop.f32.mrb[10].mxu1 }
0x142c   :  { %v1703_v28 = vpop.f32.mrb[11].mxu1  ;;  %v1702_v53 = vadd.f32 %v1701_v19, %v2705_v43 }
0x142d   :  { %v1704_v29 = vadd.f32 %v1703_v28, %v2695_v37 }
0x142e   :  { %v1904_v55 = vmul.f32 -1.442695, %v1702_v53 }
0x142f   :  { %2496 = vtanh.f32 %v1704_v29  ;;  %v1905_v6 = vmul.f32 -1.442695, %v1704_v29 }
0x1430   :  { %2498 = vpow2.f32 %v1904_v55 }
0x1439   :  { %v2497_v41 = vpop.eup %2496  ;;  %v1610_v49 = vpop.permute.xlu1 %1609 }
0x143a   :  { %v1612_v50 = vmul.f32 %v2495_v39, %v1610_v49  ;;  %1721 = vrot.lane.b32.xlu0 %v2497_v41, %s2528_s21  ;;  %v2499_v26 = vpop.eup %2498 }
0x143b   :  { %v1712_v27 = vadd.f32 1.0, %v2499_v26 }
0x143c   :  { %1614 = vrot.lane.b32.xlu1 %v1612_v50, %s2528_s21 }
0x143d   :  { %2500 = vrcp.f32 %v1712_v27 }
0x1447   :  { %v2501_v30 = vpop.eup %2500 }
0x1448   :  { %v1719_v56 = vmul.f32 %v2501_v30, %v3185_v34 }
0x14ac   :  { %v1722_v54 = vpop.permute.xlu0 %1721 }
0x14ad   :  { %v1724_v37 = vmul.f32 %v2501_v30, %v1722_v54 }
0x14ae   :  { %v1615_v31 = vpop.permute.xlu1 %1614 }
0x14af   :  { %v1617_v46 = vadd.f32 %v1615_v31, %v1607_v47  ;;  %1726 = vrot.lane.b32.xlu0 %v1724_v37, %s2528_s21 }
0x14b1   :  { %2502 = vtanh.f32 %v1617_v46 }
0x14b2   :  { %2504 = vpow2.f32 %v1902_v5 }
0x14bb   :  { %v2503_v51 = vpop.eup %2502 }
0x14bc   :  { %1620 = vrot.lane.b32.xlu1 %v2503_v51, %s2528_s21  ;;  %v2505_v43 = vpop.eup %2504 }
0x14bd   :  { %v1601_v2 = vadd.f32 1.0, %v2505_v43 }
0x14bf   :  { %2506 = vrcp.f32 %v1601_v2 }
0x14c9   :  { %v2507_v52 = vpop.eup %2506 }
0x1521   :  { %v1727_v60 = vpop.permute.xlu0 %1726 }
0x1522   :  { %v1729_v23 = vadd.f32 %v1727_v60, %v1719_v56 }
0x1524   :  { %2508 = vtanh.f32 %v1729_v23 }
0x1525   :  { %2510 = vpow2.f32 %v1905_v6 }
0x152e   :  { %v2509_v16 = vpop.eup %2508  ;;  %v1621_v61 = vpop.permute.xlu1 %1620 }
0x152f   :  { %v1623_v63 = vmul.f32 %v2507_v52, %v1621_v61  ;;  %1732 = vrot.lane.b32.xlu0 %v2509_v16, %s2528_s21  ;;  %v2511_v48 = vpop.eup %2510 }
0x1530   :  { %v1713_v40 = vadd.f32 1.0, %v2511_v48 }
0x1531   :  { %1737 = vrot.lane.b32.xlu1 %v1623_v63, %s2528_s21 }
0x1532   :  { %2512 = vrcp.f32 %v1713_v40 }
0x153c   :  { %v2513_v7 = vpop.eup %2512 }
0x15a1   :  { %v1733_v12 = vpop.permute.xlu0 %1732 }
0x15a2   :  { %v1735_v35 = vmul.f32 %v2513_v7, %v1733_v12 }
0x15a3   :  { %v1738_v38 = vpop.permute.xlu1 %1737 }
0x15a4   :  { %v1740_v22 = vsel %vm201_vm2, %v1735_v35, %v1738_v38 }
0x15a5   :  { %1806 = vmatmul.mubr.f32.vlgmr.msra.gmra.mrb[12].mxu1 %v1740_v22 }
0x1678   :  { %v1807_v57 = vpop.f32.mrb[12].mxu1 }
0x1679   :  { %v1809_v32 = vpop.f32.mrb[13].mxu1  ;;  %v1808_v25 = vadd.f32 %v1807_v57, %v2907_v24 }
0x167a   :  { %v1810_v34 = vadd.f32 %v1809_v32, %v2901_v13  ;;  %v12_v13 = vstv %s3246_s6 }
0x167b   :  { %v1906_v42 = vmul.f32 -1.442695, %v1808_v25  ;;  %13 = vst [vmem:[#allocation2] sm:$0x1] %v12_v13 }
0x167c   :  { %2514 = vtanh.f32 %v1810_v34  ;;  %v1907_v14 = vmul.f32 -1.442695, %v1810_v34 }
0x167d   :  { %2516 = vpow2.f32 %v1906_v42 }
0x1682   :  { %v1909_v10 = vld [vmem:[#allocation2] ss:$0 sm:$0xff] }
0x1686   :  { %v2515_v62 = vpop.eup %2514 }
0x1687   :  { %1827 = vrot.lane.b32.xlu0 %v2515_v62, %s2528_s21  ;;  %v2517_v33 = vpop.eup %2516 }
0x1688   :  { %v1818_v36 = vadd.f32 1.0, %v2517_v33 }
0x168a   :  { %2518 = vrcp.f32 %v1818_v36 }
0x1694   :  { %v2519_v17 = vpop.eup %2518 }
0x1695   :  { %v1825_v8 = vmul.f32 %v2519_v17, %v1617_v46 }
0x16f9   :  { %v1828_v45 = vpop.permute.xlu0 %1827 }
0x16fa   :  { %v1830_v4 = vmul.f32 %v2519_v17, %v1828_v45 }
0x16fc   :  { %1832 = vrot.lane.b32.xlu1 %v1830_v4, %s2528_s21 }
0x176e   :  { %v1833_v44 = vpop.permute.xlu1 %1832 }
0x176f   :  { %v1835_v9 = vadd.f32 %v1833_v44, %v1825_v8 }
0x1771   :  { %2520 = vtanh.f32 %v1835_v9 }
0x1772   :  { %2522 = vpow2.f32 %v1907_v14 }
0x177b   :  { %v2521_v24 = vpop.eup %2520 }
0x177c   :  { %1838 = vrot.lane.b32.xlu0 %v2521_v24, %s2528_s21  ;;  %v2523_v15 = vpop.eup %2522 }
0x177d   :  { %v1819_v20 = vadd.f32 1.0, %v2523_v15 }
0x177f   :  { %2524 = vrcp.f32 %v1819_v20 }
0x1789   :  { %v2525_v21 = vpop.eup %2524 }
0x17ee   :  { %v1839_v3 = vpop.permute.xlu0 %1838 }
0x17ef   :  { %v1841_v59 = vmul.f32 %v2525_v21, %v1839_v3 }
0x17f1   :  { %v1849_v0 = vmul.f32 %v1908_v58, %v1841_v59 }
0x17f3   :  { %v1850_v1 = vsel %vm201_vm2, %v1849_v0, 0.0 }
0x17f4   :  { %1851 = vadd.xlane.f32.xlu1 %v1850_v1 }
0x1881   :  { %v1852_v11 = vpop.xlane.xlu1 %1851 }
0x1882   :  { %v1860_v18 = vadd.f32 %v1909_v10, %v1852_v11 }
0x1884   :  { %1862 = vst.msk [vmem:[%s3248_s7] sm:$0xff] %vm1861_vm3, %v1860_v18 }

</bundles_post_ra>
